<compile_context>
chip_gen: v7x
topology: tpu7x:2x2x1
jax: 0.10.0
libtpu: 0.0.40
codegen_flags: <defaults>
</compile_context>

<pallas_src>
import functools
import math

import jax
import jax.numpy as jnp
from jax import lax
from jax.experimental import pallas as pl
from jax.experimental.pallas import tpu as pltpu


# ----------------------------------------------------------------------------
# Generic matmul + bias
# ----------------------------------------------------------------------------
def _matmul_bias_kernel(x_ref, w_ref, b_ref, o_ref):
    acc = jnp.dot(x_ref[...], w_ref[...], preferred_element_type=jnp.float32)
    o_ref[...] = (acc + b_ref[...]).astype(o_ref.dtype)


def matmul_bias(x, w, b):
    """x: (M, K) @ w: (K, N) + b: (N,) -> (M, N)."""
    M, K = x.shape
    N = w.shape[1]
    b2 = b.reshape(1, N).astype(jnp.float32)
    bm = M if M <= 512 else 256
    grid = (pl.cdiv(M, bm),)
    return pl.pallas_call(
        _matmul_bias_kernel,
        out_shape=jax.ShapeDtypeStruct((M, N), x.dtype),
        grid_spec=pltpu.PrefetchScalarGridSpec(
            num_scalar_prefetch=0,
            grid=grid,
            in_specs=[
                pl.BlockSpec((bm, K), lambda i: (i, 0)),
                pl.BlockSpec((K, N), lambda i: (0, 0)),
                pl.BlockSpec((1, N), lambda i: (0, 0)),
            ],
            out_specs=pl.BlockSpec((bm, N), lambda i: (i, 0)),
        ),
        compiler_params=pltpu.CompilerParams(dimension_semantics=("parallel",)),
    )(x, w, b2)


# ----------------------------------------------------------------------------
# LayerNorm over last dim
# ----------------------------------------------------------------------------
def _layernorm_kernel(x_ref, g_ref, b_ref, o_ref, *, eps):
    x = x_ref[...].astype(jnp.float32)
    mu = jnp.mean(x, axis=-1, keepdims=True)
    d = x - mu
    var = jnp.mean(d * d, axis=-1, keepdims=True)
    y = d * lax.rsqrt(var + eps) * g_ref[...] + b_ref[...]
    o_ref[...] = y.astype(o_ref.dtype)


def layernorm_lastdim(x, gamma, beta, eps=1e-5):
    M, C = x.shape
    g2 = gamma.reshape(1, C).astype(jnp.float32)
    b2 = beta.reshape(1, C).astype(jnp.float32)
    bm = M if M <= 512 else 256
    grid = (pl.cdiv(M, bm),)
    return pl.pallas_call(
        functools.partial(_layernorm_kernel, eps=eps),
        out_shape=jax.ShapeDtypeStruct((M, C), x.dtype),
        grid_spec=pltpu.PrefetchScalarGridSpec(
            num_scalar_prefetch=0,
            grid=grid,
            in_specs=[
                pl.BlockSpec((bm, C), lambda i: (i, 0)),
                pl.BlockSpec((1, C), lambda i: (0, 0)),
                pl.BlockSpec((1, C), lambda i: (0, 0)),
            ],
            out_specs=pl.BlockSpec((bm, C), lambda i: (i, 0)),
        ),
        compiler_params=pltpu.CompilerParams(dimension_semantics=("parallel",)),
    )(x, g2, b2)


# ----------------------------------------------------------------------------
# Chunked LSTM recurrence.
#   xp: (4, Lp, N, H) precomputed input pre-activations (x@Wih^T + b_ih + b_hh)
#       split per gate so every matmul / slice is lane-aligned for any H.
#   whh4: (4, H, H), whh4[k] = W_hh[k*H:(k+1)*H, :].T
# ----------------------------------------------------------------------------
def _lstm_kernel(xp_ref, whh_ref, h0_ref, c0_ref, o_ref, h_sc, c_sc, *, tc):
    @pl.when(pl.program_id(0) == 0)
    def _():
        h_sc[...] = h0_ref[...].astype(jnp.float32)
        c_sc[...] = c0_ref[...].astype(jnp.float32)

    w_i = whh_ref[0].astype(jnp.float32)
    w_f = whh_ref[1].astype(jnp.float32)
    w_g = whh_ref[2].astype(jnp.float32)
    w_o = whh_ref[3].astype(jnp.float32)

    h = h_sc[...]
    c = c_sc[...]
    # Statically unrolled chunk of tc timesteps: amortizes the ~0.35us/step
    # grid overhead and keeps every gate as its own aligned (N,H)x(H,H) matmul.
    for s in range(tc):
        i = jax.nn.sigmoid(xp_ref[0, s].astype(jnp.float32) +
                           jnp.dot(h, w_i, preferred_element_type=jnp.float32))
        f = jax.nn.sigmoid(xp_ref[1, s].astype(jnp.float32) +
                           jnp.dot(h, w_f, preferred_element_type=jnp.float32))
        g = jnp.tanh(xp_ref[2, s].astype(jnp.float32) +
                     jnp.dot(h, w_g, preferred_element_type=jnp.float32))
        o = jax.nn.sigmoid(xp_ref[3, s].astype(jnp.float32) +
                           jnp.dot(h, w_o, preferred_element_type=jnp.float32))
        c = f * c + i * g
        h = o * jnp.tanh(c)
        o_ref[s] = h.astype(o_ref.dtype)
    h_sc[...] = h
    c_sc[...] = c


def lstm_scan(xp, whh, h0, c0, *, tc=8):
    """xp: (N, L, 4, H) gate pre-activations; whh: torch weight_hh (4H, H);
       h0/c0: (N, H).  Returns hidden states (N, L, H)."""
    N, L, _, H = xp.shape
    tc = min(tc, L)
    Lp = pl.cdiv(L, tc) * tc
    xp_t = jnp.transpose(xp, (2, 1, 0, 3))                  # (4, L, N, H)
    if Lp != L:
        # trailing zero-padded steps produce finite, discarded outputs
        xp_t = jnp.pad(xp_t, ((0, 0), (0, Lp - L), (0, 0), (0, 0)))
    whh4 = jnp.transpose(whh.reshape(4, H, H), (0, 2, 1))   # (4, H, H)
    out = pl.pallas_call(
        functools.partial(_lstm_kernel, tc=tc),
        out_shape=jax.ShapeDtypeStruct((Lp, N, H), xp.dtype),
        grid_spec=pltpu.PrefetchScalarGridSpec(
            num_scalar_prefetch=0,
            grid=(Lp // tc,),
            in_specs=[
                pl.BlockSpec((4, tc, N, H), lambda t: (0, t, 0, 0)),
                pl.BlockSpec((4, H, H), lambda t: (0, 0, 0)),
                pl.BlockSpec((N, H), lambda t: (0, 0)),
                pl.BlockSpec((N, H), lambda t: (0, 0)),
            ],
            out_specs=pl.BlockSpec((tc, N, H), lambda t: (t, 0, 0)),
            scratch_shapes=[pltpu.VMEM((N, H), jnp.float32),
                            pltpu.VMEM((N, H), jnp.float32)],
        ),
        compiler_params=pltpu.CompilerParams(dimension_semantics=("arbitrary",)),
    )(xp_t, whh4, h0, c0)
    return jnp.transpose(out[:L], (1, 0, 2))                # (N, L, H)


def run_bilstm(unf, p, hidden, prefix):
    """Bi-LSTM with a single fused input projection for both directions."""
    N, L, I = unf.shape
    H = hidden
    w_cat = jnp.concatenate([p[f'{prefix}_wih_f'].T, p[f'{prefix}_wih_r'].T], axis=1)
    b_cat = jnp.concatenate([p[f'{prefix}_bih_f'] + p[f'{prefix}_bhh_f'],
                             p[f'{prefix}_bih_r'] + p[f'{prefix}_bhh_r']])
    xp = matmul_bias(unf.reshape(N * L, I), w_cat, b_cat)   # (N*L, 8H)
    xp = xp.reshape(N, L, 2, 4, H)
    zeros = jnp.zeros((N, H), unf.dtype)
    fwd = lstm_scan(xp[:, :, 0], p[f'{prefix}_whh_f'], zeros, zeros)
    rev = lstm_scan(xp[:, ::-1, 1], p[f'{prefix}_whh_r'], zeros, zeros)[:, ::-1, :]
    return jnp.concatenate([fwd, rev], axis=-1)             # (N, L, 2H)


def run_unilstm(unf, wih, whh, bih, bhh, h0, c0, hidden):
    N, L, I = unf.shape
    H = hidden
    xp = matmul_bias(unf.reshape(N * L, I), wih.T, bih + bhh).reshape(N, L, 4, H)
    if h0 is None:
        h0 = jnp.zeros((N, H), unf.dtype)
    if c0 is None:
        c0 = jnp.zeros((N, H), unf.dtype)
    return lstm_scan(xp, whh, h0, c0)                       # (N, L, H)


# ----------------------------------------------------------------------------
# Fused 1x1-conv + AllHeadPReLULayerNormalization4DC
#   per-row: y = x@w + b; per head group of E columns: PReLU(alpha_h) then
#   LayerNorm over the E columns with per-(h,e) gamma/beta.
#   Group statistics via one-hot segment matmuls (no in-kernel reshapes).
# ----------------------------------------------------------------------------
def _conv_headnorm_kernel(x_ref, w_ref, b_ref, a_ref, g_ref, bt_ref, seg_ref,
                          o_ref, *, eps, inv_e):
    y = jnp.dot(x_ref[...], w_ref[...], preferred_element_type=jnp.float32)
    y = y + b_ref[...]
    y = jnp.where(y >= 0, y, a_ref[...] * y)                # per-head PReLU
    seg = seg_ref[...]                                      # (Cout, G) one-hot
    mean_g = jnp.dot(y, seg, preferred_element_type=jnp.float32) * inv_e
    mean_full = lax.dot_general(mean_g, seg, (((1,), (1,)), ((), ())),
                                preferred_element_type=jnp.float32)
    d = y - mean_full
    var_g = jnp.dot(d * d, seg, preferred_element_type=jnp.float32) * inv_e
    inv_full = lax.dot_general(lax.rsqrt(var_g + eps), seg,
                               (((1,), (1,)), ((), ())),
                               preferred_element_type=jnp.float32)
    o_ref[...] = (d * inv_full * g_ref[...] + bt_ref[...]).astype(o_ref.dtype)


def conv_headnorm(x, w, b, alpha, gamma, beta, e_per_head, eps=1e-5):
    M, Cin = x.shape
    Cout = w.shape[1]
    G = Cout // e_per_head
    a_full = jnp.repeat(alpha.reshape(G), e_per_head).reshape(1, Cout).astype(jnp.float32)
    g_full = gamma.reshape(1, Cout).astype(jnp.float32)
    bt_full = beta.reshape(1, Cout).astype(jnp.float32)
    seg = (jnp.arange(Cout)[:, None] // e_per_head ==
           jnp.arange(G)[None, :]).astype(jnp.float32)      # (Cout, G)
    b2 = b.reshape(1, Cout).astype(jnp.float32)
    bm = M if M <= 512 else 256
    grid = (pl.cdiv(M, bm),)
    return pl.pallas_call(
        functools.partial(_conv_headnorm_kernel, eps=eps, inv_e=1.0 / e_per_head),
        out_shape=jax.ShapeDtypeStruct((M, Cout), x.dtype),
        grid_spec=pltpu.PrefetchScalarGridSpec(
            num_scalar_prefetch=0,
            grid=grid,
            in_specs=[
                pl.BlockSpec((bm, Cin), lambda i: (i, 0)),
                pl.BlockSpec((Cin, Cout), lambda i: (0, 0)),
                pl.BlockSpec((1, Cout), lambda i: (0, 0)),
                pl.BlockSpec((1, Cout), lambda i: (0, 0)),
                pl.BlockSpec((1, Cout), lambda i: (0, 0)),
                pl.BlockSpec((1, Cout), lambda i: (0, 0)),
                pl.BlockSpec((Cout, G), lambda i: (0, 0)),
            ],
            out_specs=pl.BlockSpec((bm, Cout), lambda i: (i, 0)),
        ),
        compiler_params=pltpu.CompilerParams(dimension_semantics=("parallel",)),
    )(x, w, b2, a_full, g_full, bt_full, seg)


# ----------------------------------------------------------------------------
# Fused concat_proj: 1x1 conv + PReLU + channel LayerNorm + residual add
# ----------------------------------------------------------------------------
def _proj_prelu_ln_res_kernel(x_ref, r_ref, w_ref, b_ref, g_ref, bt_ref, o_ref,
                              *, eps, alpha):
    y = jnp.dot(x_ref[...], w_ref[...], preferred_element_type=jnp.float32)
    y = y + b_ref[...]
    y = jnp.where(y >= 0, y, alpha * y)
    mu = jnp.mean(y, axis=-1, keepdims=True)
    d = y - mu
    var = jnp.mean(d * d, axis=-1, keepdims=True)
    out = d * lax.rsqrt(var + eps) * g_ref[...] + bt_ref[...]
    out = out + r_ref[...].astype(jnp.float32)
    o_ref[...] = out.astype(o_ref.dtype)


def proj_prelu_ln_residual(x, res, w, b, gamma, beta, alpha, eps=1e-5):
    M, Cin = x.shape
    Cout = w.shape[1]
    b2 = b.reshape(1, Cout).astype(jnp.float32)
    g2 = gamma.reshape(1, Cout).astype(jnp.float32)
    bt2 = beta.reshape(1, Cout).astype(jnp.float32)
    bm = M if M <= 512 else 256
    grid = (pl.cdiv(M, bm),)
    return pl.pallas_call(
        functools.partial(_proj_prelu_ln_res_kernel, eps=eps, alpha=float(alpha)),
        out_shape=jax.ShapeDtypeStruct((M, Cout), x.dtype),
        grid_spec=pltpu.PrefetchScalarGridSpec(
            num_scalar_prefetch=0,
            grid=grid,
            in_specs=[
                pl.BlockSpec((bm, Cin), lambda i: (i, 0)),
                pl.BlockSpec((bm, Cout), lambda i: (i, 0)),
                pl.BlockSpec((Cin, Cout), lambda i: (0, 0)),
                pl.BlockSpec((1, Cout), lambda i: (0, 0)),
                pl.BlockSpec((1, Cout), lambda i: (0, 0)),
                pl.BlockSpec((1, Cout), lambda i: (0, 0)),
            ],
            out_specs=pl.BlockSpec((bm, Cout), lambda i: (i, 0)),
        ),
        compiler_params=pltpu.CompilerParams(dimension_semantics=("parallel",)),
    )(x, res, w, b2, g2, bt2)


# ----------------------------------------------------------------------------
# Softmax attention, several heads per grid step
# ----------------------------------------------------------------------------
def _attn_kernel(q_ref, k_ref, v_ref, o_ref, *, scale):
    q = q_ref[...].astype(jnp.float32)
    k = k_ref[...].astype(jnp.float32)
    v = v_ref[...]
    s = jnp.einsum('hqd,hkd->hqk', q, k,
                   preferred_element_type=jnp.float32) * scale
    s = s - jnp.max(s, axis=-1, keepdims=True)
    p = jnp.exp(s)
    denom = jnp.sum(p, axis=-1, keepdims=True)
    p = p * pl.reciprocal(denom, approx=True)               # EUP slot, nearly free
    o = jnp.einsum('hqk,hkd->hqd', p.astype(v.dtype), v,
                   preferred_element_type=jnp.float32)
    o_ref[...] = o.astype(o_ref.dtype)


def attention(q, k, v, n_head):
    BH, Tq, D = q.shape
    Tk = k.shape[1]
    scale = 1.0 / math.sqrt(D)
    # Batch n_head heads per grid step when the per-step working set is small.
    bytes_per_head = 4 * (Tq * Tk + Tq * D + 2 * Tk * D)
    hb = n_head if n_head * bytes_per_head < (8 << 20) else 1
    # TODO(synk): for very long sequences on v7x (64 MiB VMEM) switch to a
    # flash-style Tk-tiled online softmax instead of the full score matrix.
    grid = (BH // hb,)
    return pl.pallas_call(
        functools.partial(_attn_kernel, scale=scale),
        out_shape=jax.ShapeDtypeStruct((BH, Tq, D), q.dtype),
        grid_spec=pltpu.PrefetchScalarGridSpec(
            num_scalar_prefetch=0,
            grid=grid,
            in_specs=[
                pl.BlockSpec((hb, Tq, D), lambda i: (i, 0, 0)),
                pl.BlockSpec((hb, Tk, D), lambda i: (i, 0, 0)),
                pl.BlockSpec((hb, Tk, D), lambda i: (i, 0, 0)),
            ],
            out_specs=pl.BlockSpec((hb, Tq, D), lambda i: (i, 0, 0)),
        ),
        compiler_params=pltpu.CompilerParams(dimension_semantics=("parallel",)),
    )(q, k, v)


# ----------------------------------------------------------------------------
# Filter gate: lane-dense FMA kernel, gate/bias precomputed once in plain JAX
# ----------------------------------------------------------------------------
def _filter_gate_kernel(x_ref, g_ref, b_ref, o_ref):
    o_ref[...] = (x_ref[...] * g_ref[...] + b_ref[...]).astype(o_ref.dtype)


def filter_gate_cl(p, x_cl, gtf, gtb):
    # TODO(synk): WHYVFilterGate source not provided; implemented as
    #   out = x * sigmoid(w1*gtf + b1) + tanh(w2*gtb + b2)
    # with per-(channel,freq) parameters broadcast over time.
    B, T, Qf, C = x_cl.shape
    g = jax.nn.sigmoid(p['w1'][None] * gtf[..., 0] + p['b1'][None])   # (B, C, Qf)
    bia = jnp.tanh(p['w2'][None] * gtb[..., 0] + p['b2'][None])       # (B, C, Qf)
    g_cl = jnp.transpose(g, (0, 2, 1)).reshape(B, 1, Qf, C).astype(x_cl.dtype)
    bia_cl = jnp.transpose(bia, (0, 2, 1)).reshape(B, 1, Qf, C).astype(x_cl.dtype)
    out = pl.pallas_call(
        _filter_gate_kernel,
        out_shape=jax.ShapeDtypeStruct((B, T, Qf, C), x_cl.dtype),
        grid_spec=pltpu.PrefetchScalarGridSpec(
            num_scalar_prefetch=0,
            grid=(B,),
            in_specs=[
                pl.BlockSpec((1, T, Qf, C), lambda b: (b, 0, 0, 0)),
                pl.BlockSpec((1, 1, Qf, C), lambda b: (b, 0, 0, 0)),
                pl.BlockSpec((1, 1, Qf, C), lambda b: (b, 0, 0, 0)),
            ],
            out_specs=pl.BlockSpec((1, T, Qf, C), lambda b: (b, 0, 0, 0)),
        ),
        compiler_params=pltpu.CompilerParams(dimension_semantics=("parallel",)),
    )(x_cl, g_cl, bia_cl)
    return jnp.transpose(out, (0, 3, 2, 1))                 # B C Q T


# ----------------------------------------------------------------------------
# Glue helpers (plain JAX)
# ----------------------------------------------------------------------------
def _unfold_seq(x, K, hs):
    """x: (N, S, C) -> (N, L, C*K), feature index c*K + k == x[n, l*hs + k, c]
       (matches F.unfold channel-major block ordering)."""
    N, S, C = x.shape
    L = (S - K) // hs + 1
    cols = [x[:, k:k + (L - 1) * hs + 1:hs, :] for k in range(K)]
    w = jnp.stack(cols, axis=-1)          # (N, L, C, K)
    return w.reshape(N, L, C * K)


def _conv_transpose1d(u, w, b, K, hs, out_len):
    """ConvTranspose1d.  u: (N, L, Cin); w: (Cin, Cout, K) (torch layout);
       b: (Cout,) -> (N, out_len, Cout).  Matmul in Pallas, overlap-add in JAX."""
    N, L, Cin = u.shape
    Cout = w.shape[1]
    y = matmul_bias(u.reshape(N * L, Cin), w.reshape(Cin, Cout * K),
                    jnp.zeros((Cout * K,), u.dtype))
    y = y.reshape(N, L, Cout, K)
    out = jnp.zeros((N, out_len, Cout), u.dtype)
    for k in range(K):
        out = out.at[:, k:k + (L - 1) * hs + 1:hs, :].add(y[:, :, :, k])
    return out + b.reshape(1, 1, Cout)


# ----------------------------------------------------------------------------
# Module forward passes
# ----------------------------------------------------------------------------
def causal_intra_inter_band(p, x, prev, *, kernel_size, emb_hs, hidden, eps=1e-5):
    B, C, oQ, oT = x.shape
    K = kernel_size
    pad = K - emb_hs
    T = math.ceil((oT + 2 * pad - K) / emb_hs) * emb_hs + K
    Q = math.ceil((oQ + 2 * pad - K) / emb_hs) * emb_hs + K
    inp = jnp.transpose(x, (0, 3, 2, 1))                    # B T Q C
    inp = jnp.pad(inp, ((0, 0), (pad, T - oT - pad), (pad, Q - oQ - pad), (0, 0)))

    # ---- intra (bi-LSTM along padded Q) ----
    xn = layernorm_lastdim(inp.reshape(-1, C), p['intra_norm_g'],
                           p['intra_norm_b'], eps).reshape(B * T, Q, C)
    unf = _unfold_seq(xn, K, emb_hs)                        # (B*T, L, C*K)
    lstm_out = run_bilstm(unf, p, hidden, 'intra')          # (B*T, L, 2H)
    intra = _conv_transpose1d(lstm_out, p['intra_ct_w'], p['intra_ct_b'],
                              K, emb_hs, Q)                 # (B*T, Q, C)
    intra = intra.reshape(B, T, Q, C) + inp

    # ---- inter (uni-LSTM along padded T, with previous hidden state) ----
    inter_input = jnp.transpose(intra, (0, 2, 1, 3))        # B Q T C
    yn = layernorm_lastdim(inter_input.reshape(-1, C), p['inter_norm_g'],
                           p['inter_norm_b'], eps).reshape(B * Q, T, C)
    unf2 = _unfold_seq(yn, K, emb_hs)                       # (B*Q, Lt, C*K)
    h0 = prev[0][0] if prev is not None else None
    c0 = prev[1][0] if prev is not None else None
    inter_h = run_unilstm(unf2, p['inter_wih'], p['inter_whh'],
                          p['inter_bih'], p['inter_bhh'], h0, c0, hidden)
    inter = _conv_transpose1d(inter_h, p['inter_ct_w'], p['inter_ct_b'],
                              K, emb_hs, T)                 # (B*Q, T, C)
    inter = inter.reshape(B, Q, T, C) + inter_input
    out = jnp.transpose(inter, (0, 3, 1, 2))                # B C Q T
    return out[:, :, pad:pad + oQ, pad:pad + oT]


def selection_frame_attention(p, x, sel, *, n_head, eps=1e-5):
    """Returns the attention output in channels-last layout (B, T, Q, C)."""
    B, C, Qf, T_in = x.shape
    T_sel = sel.shape[-1]
    T_tot = T_in + T_sel
    E = C // n_head

    inp_cl = jnp.transpose(x, (0, 3, 2, 1))                 # B T Q C
    sel_cl = jnp.transpose(sel, (0, 3, 2, 1))
    cat_cl = jnp.concatenate([inp_cl, sel_cl], axis=1)      # B Ttot Q C

    def to_heads(y, Tdim):
        # (B, Tdim, Qf, C) -> (B*H, Tdim, E*Qf), feature index e*Qf + q
        y = y.reshape(B, Tdim, Qf, n_head, E)
        y = jnp.transpose(y, (0, 3, 1, 4, 2))
        return y.reshape(B * n_head, Tdim, E * Qf)

    # Q projection + per-head PReLU + per-head LayerNorm (one fused kernel).
    qy = conv_headnorm(inp_cl.reshape(-1, C), p['wq'], p['bq'],
                       p['aq'], p['gq'], p['btq'], E, eps)
    Qm = to_heads(qy.reshape(B, T_in, Qf, C), T_in)

    # K and V share the concatenated input: fused [wk|wv] projection + norms.
    w_kv = jnp.concatenate([p['wk'], p['wv']], axis=1)      # (C, 2C)
    b_kv = jnp.concatenate([p['bk'], p['bv']])
    a_kv = jnp.concatenate([p['ak'], p['av']])
    g_kv = jnp.concatenate([p['gk'].reshape(-1), p['gv'].reshape(-1)])
    bt_kv = jnp.concatenate([p['btk'].reshape(-1), p['btv'].reshape(-1)])
    kvy = conv_headnorm(cat_cl.reshape(-1, C), w_kv, b_kv, a_kv, g_kv, bt_kv,
                        E, eps).reshape(B, T_tot, Qf, 2 * C)
    Km = to_heads(kvy[..., :C], T_tot)
    Vm = to_heads(kvy[..., C:], T_tot)

    att = attention(Qm, Km, Vm, n_head)                     # (B*H, T_in, E*Qf)
    att = att.reshape(B, n_head, T_in, E, Qf)
    att = jnp.transpose(att, (0, 2, 4, 1, 3)).reshape(B, T_in, Qf, C)

    # concat_proj (1x1 conv -> PReLU -> channel LayerNorm) + residual, fused.
    out = proj_prelu_ln_residual(att.reshape(-1, C), inp_cl.reshape(-1, C),
                                 p['wp'], p['bp'], p['proj_ln_g'],
                                 p['proj_ln_b'], p['prelu_alpha'], eps)
    return out.reshape(B, T_in, Qf, C)


def whyv2_block_forward(params, inputs, *, kernel_size=4, emb_hs=1,
                        hidden=192, n_head=4, eps=1e-5):
    y = causal_intra_inter_band(params, inputs['x'], inputs['lstm_hidden'],
                                kernel_size=kernel_size, emb_hs=emb_hs,
                                hidden=hidden, eps=eps)
    y_cl = selection_frame_attention(params, y, inputs['selection_frame'],
                                     n_head=n_head, eps=eps)
    return filter_gate_cl(params, y_cl, inputs['gtf'], inputs['gtb'])


# ----------------------------------------------------------------------------
# Deterministic parameter init (synthetic; shapes follow the torch __init__)
# ----------------------------------------------------------------------------
def init_params(key, emb_dim, kernel_size, hidden, n_head, n_freqs):
    C, K, H = emb_dim, kernel_size, hidden
    E = C // n_head
    in_ch = C * K
    keys = list(jax.random.split(key, 32))
    kit = iter(keys)

    def w(shape, scale=0.1):
        return (scale * jax.random.normal(next(kit), shape)).astype(jnp.float32)

    p = {}
    # CausalIntraAndInterBandModule
    p['intra_norm_g'] = jnp.ones((C,), jnp.float32)
    p['intra_norm_b'] = jnp.zeros((C,), jnp.float32)
    for d in ('f', 'r'):
        p[f'intra_wih_{d}'] = w((4 * H, in_ch))
        p[f'intra_whh_{d}'] = w((4 * H, H))
        p[f'intra_bih_{d}'] = w((4 * H,))
        p[f'intra_bhh_{d}'] = w((4 * H,))
    p['intra_ct_w'] = w((2 * H, C, K))          # ConvTranspose1d(2H, C, K)
    p['intra_ct_b'] = w((C,))
    p['inter_norm_g'] = jnp.ones((C,), jnp.float32)
    p['inter_norm_b'] = jnp.zeros((C,), jnp.float32)
    p['inter_wih'] = w((4 * H, in_ch))
    p['inter_whh'] = w((4 * H, H))
    p['inter_bih'] = w((4 * H,))
    p['inter_bhh'] = w((4 * H,))
    p['inter_ct_w'] = w((H, C, K))              # ConvTranspose1d(H, C, K)
    p['inter_ct_b'] = w((C,))
    # SelectionFrameAttention
    for nm in ('q', 'k', 'v'):
        p[f'w{nm}'] = w((C, C))                 # 1x1 conv weight (in, out)
        p[f'b{nm}'] = w((C,))
        p[f'a{nm}'] = 0.25 * jnp.ones((n_head,), jnp.float32)
        p[f'g{nm}'] = jnp.ones((n_head, E), jnp.float32)
        p[f'bt{nm}'] = jnp.zeros((n_head, E), jnp.float32)
    p['wp'] = w((C, C))
    p['bp'] = w((C,))
    p['prelu_alpha'] = 0.25
    p['proj_ln_g'] = jnp.ones((C,), jnp.float32)
    p['proj_ln_b'] = jnp.zeros((C,), jnp.float32)
    # WHYVFilterGate
    p['w1'] = w((C, n_freqs))
    p['b1'] = w((C, n_freqs))
    p['w2'] = w((C, n_freqs))
    p['b2'] = w((C, n_freqs))
    return p


# ----------------------------------------------------------------------------
if __name__ == "__main__":
    key = jax.random.PRNGKey(0)
    B, C, oQ, oT = 2, 16, 8, 10          # small shapes
    n_head = 4
    kernel_size, emb_hs, hidden = 4, 1, 32
    n_sel = 4
    n_freqs = oQ

    pk, xk, sk, fk, bk, hk, ck = jax.random.split(key, 7)
    params = init_params(pk, C, kernel_size, hidden, n_head, n_freqs)

    x = jax.random.normal(xk, (B, C, oQ, oT), jnp.float32)
    selection_frame = jax.random.normal(sk, (B, C, oQ, n_sel), jnp.float32)
    gtf = jax.random.normal(fk, (B, C, n_freqs, 1), jnp.float32)
    gtb = jax.random.normal(bk, (B, C, n_freqs, 1), jnp.float32)

    pad = kernel_size - emb_hs
    Qp = oQ + 2 * pad                    # padded Q -> inter LSTM batch B*Qp
    lstm_h0 = 0.1 * jax.random.normal(hk, (1, B * Qp, hidden), jnp.float32)
    lstm_c0 = 0.1 * jax.random.normal(ck, (1, B * Qp, hidden), jnp.float32)

    inputs = {'x': x, 'lstm_hidden': (lstm_h0, lstm_c0),
              'selection_frame': selection_frame, 'gtf': gtf, 'gtb': gtb}

    out = whyv2_block_forward(params, inputs, kernel_size=kernel_size,
                              emb_hs=emb_hs, hidden=hidden, n_head=n_head)
    out = jax.block_until_ready(out)
    assert out.shape == (B, C, oQ, oT), out.shape
    assert bool(jnp.all(jnp.isfinite(out)))
    print("KERNEL_OK")
</pallas_src>

<mosaic_0001>
module attributes {stable_mosaic.version = 11 : i64} {
  func.func @_layernorm_kernel(%arg0: i32, %arg1: memref<448x16xf32, #tpu.memory_space<vmem>>, %arg2: memref<1x16xf32, #tpu.memory_space<vmem>>, %arg3: memref<1x16xf32, #tpu.memory_space<vmem>>, %arg4: memref<448x16xf32, #tpu.memory_space<vmem>>) attributes {dimension_semantics = [#tpu.dimension_semantics<parallel>], iteration_bounds = array<i64: 1>, scalar_prefetch = 0 : i64, scratch_operands = 0 : i64, tpu.core_type = #tpu.core_type<tc>, window_params = [{transform_indices = @transform_0, window_bounds = array<i64: 448, 16>}, {pipeline_mode = #tpu.pipeline_mode<synchronous>, transform_indices = @transform_1, window_bounds = array<i64: 1, 16>}, {pipeline_mode = #tpu.pipeline_mode<synchronous>, transform_indices = @transform_2, window_bounds = array<i64: 1, 16>}, {transform_indices = @transform_3, window_bounds = array<i64: 448, 16>}]} {
    %c0 = arith.constant 0 : index
    %c0_0 = arith.constant 0 : index
    %0 = vector.load %arg1[%c0, %c0_0] : memref<448x16xf32, #tpu.memory_space<vmem>>, vector<448x16xf32>
    %cst = arith.constant dense<0.000000e+00> : vector<448xf32>
    %1 = vector.multi_reduction <add>, %0, %cst [1] : vector<448x16xf32> to vector<448xf32>
    %2 = vector.shape_cast %1 : vector<448xf32> to vector<448x1xf32>
    %cst_1 = arith.constant 1.600000e+01 : f32
    %3 = vector.broadcast %cst_1 : f32 to vector<448x1xf32>
    %4 = arith.divf %2, %3 : vector<448x1xf32>
    %5 = vector.broadcast %4 : vector<448x1xf32> to vector<448x16xf32>
    %6 = arith.subf %0, %5 : vector<448x16xf32>
    %7 = arith.mulf %6, %6 : vector<448x16xf32>
    %cst_2 = arith.constant dense<0.000000e+00> : vector<448xf32>
    %8 = vector.multi_reduction <add>, %7, %cst_2 [1] : vector<448x16xf32> to vector<448xf32>
    %9 = vector.shape_cast %8 : vector<448xf32> to vector<448x1xf32>
    %cst_3 = arith.constant 1.600000e+01 : f32
    %10 = vector.broadcast %cst_3 : f32 to vector<448x1xf32>
    %11 = arith.divf %9, %10 : vector<448x1xf32>
    %cst_4 = arith.constant 9.99999974E-6 : f32
    %12 = vector.broadcast %cst_4 : f32 to vector<448x1xf32>
    %13 = arith.addf %11, %12 : vector<448x1xf32>
    %14 = math.rsqrt %13 : vector<448x1xf32>
    %15 = vector.broadcast %14 : vector<448x1xf32> to vector<448x16xf32>
    %16 = arith.mulf %6, %15 : vector<448x16xf32>
    %c0_5 = arith.constant 0 : index
    %c0_6 = arith.constant 0 : index
    %17 = vector.load %arg2[%c0_5, %c0_6] : memref<1x16xf32, #tpu.memory_space<vmem>>, vector<1x16xf32>
    %18 = vector.broadcast %17 : vector<1x16xf32> to vector<448x16xf32>
    %19 = arith.mulf %16, %18 : vector<448x16xf32>
    %c0_7 = arith.constant 0 : index
    %c0_8 = arith.constant 0 : index
    %20 = vector.load %arg3[%c0_7, %c0_8] : memref<1x16xf32, #tpu.memory_space<vmem>>, vector<1x16xf32>
    %21 = vector.broadcast %20 : vector<1x16xf32> to vector<448x16xf32>
    %22 = arith.addf %19, %21 : vector<448x16xf32>
    %c0_9 = arith.constant 0 : index
    %c0_10 = arith.constant 0 : index
    %23 = vector.load %arg4[%c0_9, %c0_10] : memref<448x16xf32, #tpu.memory_space<vmem>>, vector<448x16xf32>
    tpu.vector_store %arg4[%c0_9, %c0_10], %22 {strides = array<i32>} : memref<448x16xf32, #tpu.memory_space<vmem>>, vector<448x16xf32>,
    return
  }
  func.func @transform_0(%arg0: i32) -> (i32, i32) {
    %c0_i32 = arith.constant 0 : i32
    %c0_i32_0 = arith.constant 0 : i32
    return %arg0, %c0_i32 : i32, i32
  }
  func.func @transform_1(%arg0: i32) -> (i32, i32) {
    %c0_i32 = arith.constant 0 : i32
    %c0_i32_0 = arith.constant 0 : i32
    %c0_i32_1 = arith.constant 0 : i32
    return %c0_i32, %c0_i32_0 : i32, i32
  }
  func.func @transform_2(%arg0: i32) -> (i32, i32) {
    %c0_i32 = arith.constant 0 : i32
    %c0_i32_0 = arith.constant 0 : i32
    %c0_i32_1 = arith.constant 0 : i32
    return %c0_i32, %c0_i32_0 : i32, i32
  }
  func.func @transform_3(%arg0: i32) -> (i32, i32) {
    %c0_i32 = arith.constant 0 : i32
    %c0_i32_0 = arith.constant 0 : i32
    return %arg0, %c0_i32 : i32, i32
  }
}

</mosaic_0001>

<bundles_post_ra>
// kernel: tpu_custom_call.1
= control target key start
LH: loop header
LB: loop body
LE: loop exit
PB: predicated region body
PF: predicated region fallthrough
CT: control target
= control target key end

     0   :  { %vm70_vm0 = vcmask 130048   ;;  %s2250_s0 = inlined_call_operand.vmem [shape: f32[448,16], index: 0, kind: input, shape index: {}]   ;;  %s2251_s1 = inlined_call_operand.vmem [shape: f32[1,16], index: 1, kind: input, shape index: {}]   ;;  %s2252_s2 = inlined_call_operand.vmem [shape: f32[1,16], index: 2, kind: input, shape index: {}]   ;;  %s2253_s3 = inlined_call_operand.vmem [shape: f32[448,16], index: 3, kind: output, shape index: {}]  }
   0x1   :  { %v1123_v0 = vld [vmem:[%s2250_s0] sm:$0xff]  ;;  %v1128_v1 = vld [vmem:[%s2250_s0 + $0x10] sm:$0xff]  ;;  %v1133_v2 = vld [vmem:[%s2250_s0 + $0x8] sm:$0xff] }
   0x2   :  { %v71_v3 = vsel %vm70_vm0, %v1123_v0, 0.0  ;;  %v77_v4 = vsel %vm70_vm0, %v1128_v1, 0.0  ;;  %v1142_v5 = vld [vmem:[%s2250_s0 + $0x18] sm:$0xff]  ;;  %v74_v6 = vsel %vm70_vm0, %v1133_v2, 0.0  ;;  %v1151_v8 = vld [vmem:[%s2250_s0 + $0x20] sm:$0xff]  ;;  %v1156_v9 = vld [vmem:[%s2250_s0 + $0x28] sm:$0xff] }
   0x3   :  { %72 = vadd.xlane.f32.xlu0 %v71_v3  ;;  %78 = vadd.xlane.f32.xlu1 %v77_v4  ;;  %v80_v7 = vsel %vm70_vm0, %v1142_v5, 0.0  ;;  %v83_v10 = vsel %vm70_vm0, %v1151_v8, 0.0  ;;  %v86_v11 = vsel %vm70_vm0, %v1156_v9, 0.0  ;;  %v1165_v12 = vld [vmem:[%s2250_s0 + $0x30] sm:$0xff]  ;;  %v1170_v13 = vld [vmem:[%s2250_s0 + $0x38] sm:$0xff]  ;;  %v1179_v16 = vld [vmem:[%s2250_s0 + $0x40] sm:$0xff] }
   0x4   :  { %v89_v14 = vsel %vm70_vm0, %v1165_v12, 0.0  ;;  %v92_v15 = vsel %vm70_vm0, %v1170_v13, 0.0  ;;  %v1184_v17 = vld [vmem:[%s2250_s0 + $0x48] sm:$0xff]  ;;  %v95_v18 = vsel %vm70_vm0, %v1179_v16, 0.0  ;;  %v1193_v20 = vld [vmem:[%s2250_s0 + $0x50] sm:$0xff]  ;;  %v1198_v21 = vld [vmem:[%s2250_s0 + $0x58] sm:$0xff] }
   0x5   :  { %v98_v19 = vsel %vm70_vm0, %v1184_v17, 0.0  ;;  %v101_v22 = vsel %vm70_vm0, %v1193_v20, 0.0  ;;  %v104_v23 = vsel %vm70_vm0, %v1198_v21, 0.0  ;;  %v1207_v24 = vld [vmem:[%s2250_s0 + $0x60] sm:$0xff]  ;;  %v1212_v25 = vld [vmem:[%s2250_s0 + $0x68] sm:$0xff]  ;;  %v1221_v28 = vld [vmem:[%s2250_s0 + $0x70] sm:$0xff] }
   0x6   :  { %v107_v26 = vsel %vm70_vm0, %v1207_v24, 0.0  ;;  %v110_v27 = vsel %vm70_vm0, %v1212_v25, 0.0  ;;  %v1226_v29 = vld [vmem:[%s2250_s0 + $0x78] sm:$0xff]  ;;  %v113_v30 = vsel %vm70_vm0, %v1221_v28, 0.0  ;;  %v1235_v32 = vld [vmem:[%s2250_s0 + $0x80] sm:$0xff]  ;;  %v1240_v33 = vld [vmem:[%s2250_s0 + $0x88] sm:$0xff] }
   0x7   :  { %75 = vadd.xlane.f32.xlu0 %v74_v6  ;;  %81 = vadd.xlane.f32.xlu1 %v80_v7  ;;  %v116_v31 = vsel %vm70_vm0, %v1226_v29, 0.0  ;;  %v119_v34 = vsel %vm70_vm0, %v1235_v32, 0.0  ;;  %v122_v35 = vsel %vm70_vm0, %v1240_v33, 0.0  ;;  %v1249_v36 = vld [vmem:[%s2250_s0 + $0x90] sm:$0xff]  ;;  %v1254_v37 = vld [vmem:[%s2250_s0 + $0x98] sm:$0xff]  ;;  %v1263_v40 = vld [vmem:[%s2250_s0 + $0xa0] sm:$0xff] }
   0x8   :  { %v125_v38 = vsel %vm70_vm0, %v1249_v36, 0.0  ;;  %v128_v39 = vsel %vm70_vm0, %v1254_v37, 0.0  ;;  %v1268_v41 = vld [vmem:[%s2250_s0 + $0xa8] sm:$0xff]  ;;  %v131_v42 = vsel %vm70_vm0, %v1263_v40, 0.0  ;;  %v1277_v44 = vld [vmem:[%s2250_s0 + $0xb0] sm:$0xff]  ;;  %v1282_v45 = vld [vmem:[%s2250_s0 + $0xb8] sm:$0xff] }
   0x9   :  { %v134_v43 = vsel %vm70_vm0, %v1268_v41, 0.0  ;;  %v137_v46 = vsel %vm70_vm0, %v1277_v44, 0.0  ;;  %v140_v47 = vsel %vm70_vm0, %v1282_v45, 0.0  ;;  %v1291_v48 = vld [vmem:[%s2250_s0 + $0xc0] sm:$0xff]  ;;  %v1296_v49 = vld [vmem:[%s2250_s0 + $0xc8] sm:$0xff]  ;;  %v1305_v52 = vld [vmem:[%s2250_s0 + $0xd0] sm:$0xff] }
   0xa   :  { %v143_v50 = vsel %vm70_vm0, %v1291_v48, 0.0  ;;  %v146_v51 = vsel %vm70_vm0, %v1296_v49, 0.0  ;;  %v1310_v53 = vld [vmem:[%s2250_s0 + $0xd8] sm:$0xff]  ;;  %v149_v54 = vsel %vm70_vm0, %v1305_v52, 0.0  ;;  %v1319_v56 = vld [vmem:[%s2250_s0 + $0xe0] sm:$0xff]  ;;  %v1324_v57 = vld [vmem:[%s2250_s0 + $0xe8] sm:$0xff] }
   0xb   :  { %84 = vadd.xlane.f32.xlu0 %v83_v10  ;;  %87 = vadd.xlane.f32.xlu1 %v86_v11  ;;  %v152_v55 = vsel %vm70_vm0, %v1310_v53, 0.0  ;;  %v155_v58 = vsel %vm70_vm0, %v1319_v56, 0.0  ;;  %v158_v59 = vsel %vm70_vm0, %v1324_v57, 0.0  ;;  %v1333_v60 = vld [vmem:[%s2250_s0 + $0xf0] sm:$0xff]  ;;  %v1338_v61 = vld [vmem:[%s2250_s0 + $0xf8] sm:$0xff]  ;;  %v1347_v3 = vld [vmem:[%s2250_s0 + $0x100] sm:$0xff] }
   0xc   :  { %v161_v62 = vsel %vm70_vm0, %v1333_v60, 0.0  ;;  %v164_v63 = vsel %vm70_vm0, %v1338_v61, 0.0  ;;  %v1352_v4 = vld [vmem:[%s2250_s0 + $0x108] sm:$0xff]  ;;  %v167_v6 = vsel %vm70_vm0, %v1347_v3, 0.0  ;;  %v1361_v10 = vld [vmem:[%s2250_s0 + $0x110] sm:$0xff]  ;;  %v1366_v11 = vld [vmem:[%s2250_s0 + $0x118] sm:$0xff] }
   0xd   :  { %v170_v7 = vsel %vm70_vm0, %v1352_v4, 0.0 }
   0xf   :  { %90 = vadd.xlane.f32.xlu0 %v89_v14  ;;  %93 = vadd.xlane.f32.xlu1 %v92_v15  ;;  %v173_v14 = vsel %vm70_vm0, %v1361_v10, 0.0  ;;  %v176_v15 = vsel %vm70_vm0, %v1366_v11, 0.0 }
  0x13   :  { %96 = vadd.xlane.f32.xlu0 %v95_v18  ;;  %99 = vadd.xlane.f32.xlu1 %v98_v19  ;;  %v1375_v18 = vld [vmem:[%s2250_s0 + $0x120] sm:$0xff]  ;;  %v1380_v19 = vld [vmem:[%s2250_s0 + $0x128] sm:$0xff] }
  0x17   :  { %102 = vadd.xlane.f32.xlu0 %v101_v22  ;;  %105 = vadd.xlane.f32.xlu1 %v104_v23  ;;  %v179_v22 = vsel %vm70_vm0, %v1375_v18, 0.0  ;;  %v182_v23 = vsel %vm70_vm0, %v1380_v19, 0.0 }
  0x1b   :  { %108 = vadd.xlane.f32.xlu0 %v107_v26  ;;  %111 = vadd.xlane.f32.xlu1 %v110_v27  ;;  %v1389_v26 = vld [vmem:[%s2250_s0 + $0x130] sm:$0xff]  ;;  %v1394_v27 = vld [vmem:[%s2250_s0 + $0x138] sm:$0xff] }
  0x1f   :  { %114 = vadd.xlane.f32.xlu0 %v113_v30  ;;  %117 = vadd.xlane.f32.xlu1 %v116_v31  ;;  %v185_v30 = vsel %vm70_vm0, %v1389_v26, 0.0  ;;  %v188_v31 = vsel %vm70_vm0, %v1394_v27, 0.0 }
  0x23   :  { %120 = vadd.xlane.f32.xlu0 %v119_v34  ;;  %123 = vadd.xlane.f32.xlu1 %v122_v35  ;;  %v1403_v34 = vld [vmem:[%s2250_s0 + $0x140] sm:$0xff]  ;;  %v1408_v35 = vld [vmem:[%s2250_s0 + $0x148] sm:$0xff] }
  0x27   :  { %126 = vadd.xlane.f32.xlu0 %v125_v38  ;;  %129 = vadd.xlane.f32.xlu1 %v128_v39  ;;  %v191_v38 = vsel %vm70_vm0, %v1403_v34, 0.0  ;;  %v194_v39 = vsel %vm70_vm0, %v1408_v35, 0.0 }
  0x2b   :  { %132 = vadd.xlane.f32.xlu0 %v131_v42  ;;  %135 = vadd.xlane.f32.xlu1 %v134_v43  ;;  %v1417_v42 = vld [vmem:[%s2250_s0 + $0x150] sm:$0xff]  ;;  %v1422_v43 = vld [vmem:[%s2250_s0 + $0x158] sm:$0xff] }
  0x2f   :  { %138 = vadd.xlane.f32.xlu0 %v137_v46  ;;  %141 = vadd.xlane.f32.xlu1 %v140_v47  ;;  %v197_v46 = vsel %vm70_vm0, %v1417_v42, 0.0  ;;  %v200_v47 = vsel %vm70_vm0, %v1422_v43, 0.0 }
  0x33   :  { %144 = vadd.xlane.f32.xlu0 %v143_v50  ;;  %147 = vadd.xlane.f32.xlu1 %v146_v51  ;;  %v1431_v50 = vld [vmem:[%s2250_s0 + $0x160] sm:$0xff]  ;;  %v1436_v51 = vld [vmem:[%s2250_s0 + $0x168] sm:$0xff] }
  0x37   :  { %150 = vadd.xlane.f32.xlu0 %v149_v54  ;;  %153 = vadd.xlane.f32.xlu1 %v152_v55  ;;  %v203_v54 = vsel %vm70_vm0, %v1431_v50, 0.0  ;;  %v206_v55 = vsel %vm70_vm0, %v1436_v51, 0.0 }
  0x3b   :  { %156 = vadd.xlane.f32.xlu0 %v155_v58  ;;  %159 = vadd.xlane.f32.xlu1 %v158_v59  ;;  %v1445_v58 = vld [vmem:[%s2250_s0 + $0x170] sm:$0xff]  ;;  %v1450_v59 = vld [vmem:[%s2250_s0 + $0x178] sm:$0xff] }
  0x3f   :  { %162 = vadd.xlane.f32.xlu0 %v161_v62  ;;  %165 = vadd.xlane.f32.xlu1 %v164_v63  ;;  %v209_v62 = vsel %vm70_vm0, %v1445_v58, 0.0  ;;  %v212_v63 = vsel %vm70_vm0, %v1450_v59, 0.0 }
  0x43   :  { %168 = vadd.xlane.f32.xlu0 %v167_v6  ;;  %171 = vadd.xlane.f32.xlu1 %v170_v7  ;;  %v1459_v6 = vld [vmem:[%s2250_s0 + $0x180] sm:$0xff]  ;;  %v1464_v7 = vld [vmem:[%s2250_s0 + $0x188] sm:$0xff] }
  0x47   :  { %174 = vadd.xlane.f32.xlu0 %v173_v14  ;;  %177 = vadd.xlane.f32.xlu1 %v176_v15  ;;  %v215_v14 = vsel %vm70_vm0, %v1459_v6, 0.0  ;;  %v218_v15 = vsel %vm70_vm0, %v1464_v7, 0.0 }
  0x4b   :  { %180 = vadd.xlane.f32.xlu0 %v179_v22  ;;  %183 = vadd.xlane.f32.xlu1 %v182_v23  ;;  %v1473_v22 = vld [vmem:[%s2250_s0 + $0x190] sm:$0xff]  ;;  %v1478_v23 = vld [vmem:[%s2250_s0 + $0x198] sm:$0xff] }
  0x4c   :  { %2271 = vst [vmem:[#allocation2_spill] sm:$0xff] %v1473_v22  ;;  %2272 = vst [vmem:[#allocation3_spill] sm:$0xff] %v1478_v23 }
  0x4f   :  { %186 = vadd.xlane.f32.xlu0 %v185_v30  ;;  %189 = vadd.xlane.f32.xlu1 %v188_v31  ;;  %v221_v30 = vsel %vm70_vm0, %v1473_v22, 0.0  ;;  %v224_v31 = vsel %vm70_vm0, %v1478_v23, 0.0 }
  0x53   :  { %192 = vadd.xlane.f32.xlu0 %v191_v38  ;;  %195 = vadd.xlane.f32.xlu1 %v194_v39  ;;  %v1487_v38 = vld [vmem:[%s2250_s0 + $0x1a0] sm:$0xff]  ;;  %v1492_v39 = vld [vmem:[%s2250_s0 + $0x1a8] sm:$0xff] }
  0x54   :  { %2273 = vst [vmem:[#allocation4_spill] sm:$0xff] %v1487_v38  ;;  %2274 = vst [vmem:[#allocation5_spill] sm:$0xff] %v1492_v39 }
  0x57   :  { %198 = vadd.xlane.f32.xlu0 %v197_v46  ;;  %201 = vadd.xlane.f32.xlu1 %v200_v47  ;;  %v227_v46 = vsel %vm70_vm0, %v1487_v38, 0.0  ;;  %v230_v47 = vsel %vm70_vm0, %v1492_v39, 0.0 }
  0x5b   :  { %204 = vadd.xlane.f32.xlu0 %v203_v54  ;;  %207 = vadd.xlane.f32.xlu1 %v206_v55  ;;  %v1501_v54 = vld [vmem:[%s2250_s0 + $0x1b0] sm:$0xff]  ;;  %v1506_v55 = vld [vmem:[%s2250_s0 + $0x1b8] sm:$0xff] }
  0x5c   :  { %2275 = vst [vmem:[#allocation6_spill] sm:$0xff] %v1501_v54 }
  0x5f   :  { %210 = vadd.xlane.f32.xlu0 %v209_v62  ;;  %213 = vadd.xlane.f32.xlu1 %v212_v63  ;;  %v233_v62 = vsel %vm70_vm0, %v1501_v54, 0.0  ;;  %v236_v63 = vsel %vm70_vm0, %v1506_v55, 0.0 }
  0x63   :  { %216 = vadd.xlane.f32.xlu0 %v215_v14  ;;  %219 = vadd.xlane.f32.xlu1 %v218_v15 }
  0x67   :  { %222 = vadd.xlane.f32.xlu0 %v221_v30  ;;  %225 = vadd.xlane.f32.xlu1 %v224_v31 }
  0x6b   :  { %228 = vadd.xlane.f32.xlu0 %v227_v46  ;;  %231 = vadd.xlane.f32.xlu1 %v230_v47 }
  0x6f   :  { %234 = vadd.xlane.f32.xlu0 %v233_v62  ;;  %237 = vadd.xlane.f32.xlu1 %v236_v63 }
  0x90   :  { %v73_v14 = vpop.xlane.xlu0 %72  ;;  %v79_v15 = vpop.xlane.xlu1 %78 }
  0x91   :  { %v240_v30 = vmul.f32 0.0625, %v73_v14  ;;  %v242_v31 = vmul.f32 0.0625, %v79_v15 }
  0x93   :  { %v1513_v39 = vsub.f32 %v1123_v0, %v240_v30  ;;  %v1516_v38 = vsub.f32 %v1128_v1, %v242_v31 }
  0x94   :  { %v76_v46 = vpop.xlane.xlu0 %75  ;;  %v82_v47 = vpop.xlane.xlu1 %81 }
  0x95   :  { %2276 = vst [vmem:[#allocation7_spill] sm:$0xff] %v1516_v38  ;;  %v241_v23 = vmul.f32 0.0625, %v76_v46  ;;  %v243_v22 = vmul.f32 0.0625, %v82_v47  ;;  %v352_v54 = vmul.f32 %v1513_v39, %v1513_v39  ;;  %v354_v62 = vmul.f32 %v1516_v38, %v1516_v38 }
  0x97   :  { %v1523_v63 = vsub.f32 %v1133_v2, %v241_v23  ;;  %v1526_v14 = vsub.f32 %v1142_v5, %v243_v22  ;;  %v408_v0 = vsel %vm70_vm0, %v352_v54, 0.0  ;;  %v414_v30 = vsel %vm70_vm0, %v354_v62, 0.0 }
  0x98   :  { %409 = vadd.xlane.f32.xlu0 %v408_v0  ;;  %v85_v1 = vpop.xlane.xlu0 %84  ;;  %v88_v15 = vpop.xlane.xlu1 %87 }
  0x99   :  { %v244_v31 = vmul.f32 0.0625, %v85_v1  ;;  %v245_v46 = vmul.f32 0.0625, %v88_v15  ;;  %v353_v47 = vmul.f32 %v1523_v63, %v1523_v63  ;;  %v355_v38 = vmul.f32 %v1526_v14, %v1526_v14 }
  0x9b   :  { %v1535_v2 = vsub.f32 %v1151_v8, %v244_v31  ;;  %v1538_v5 = vsub.f32 %v1156_v9, %v245_v46  ;;  %v411_v22 = vsel %vm70_vm0, %v353_v47, 0.0  ;;  %v417_v62 = vsel %vm70_vm0, %v355_v38, 0.0 }
  0x9c   :  { %415 = vadd.xlane.f32.xlu0 %v414_v30  ;;  %412 = vadd.xlane.f32.xlu1 %v411_v22  ;;  %v91_v23 = vpop.xlane.xlu0 %90  ;;  %v94_v54 = vpop.xlane.xlu1 %93 }
  0x9d   :  { %v246_v0 = vmul.f32 0.0625, %v91_v23  ;;  %v247_v1 = vmul.f32 0.0625, %v94_v54  ;;  %v356_v15 = vmul.f32 %v1535_v2, %v1535_v2  ;;  %v357_v8 = vmul.f32 %v1538_v5, %v1538_v5 }
  0x9f   :  { %v1547_v31 = vsub.f32 %v1165_v12, %v246_v0  ;;  %v1550_v9 = vsub.f32 %v1170_v13, %v247_v1  ;;  %v420_v30 = vsel %vm70_vm0, %v356_v15, 0.0  ;;  %v423_v47 = vsel %vm70_vm0, %v357_v8, 0.0 }
  0xa0   :  { %418 = vadd.xlane.f32.xlu1 %v417_v62  ;;  %421 = vadd.xlane.f32.xlu0 %v420_v30  ;;  %v97_v46 = vpop.xlane.xlu0 %96  ;;  %v100_v38 = vpop.xlane.xlu1 %99 }
  0xa1   :  { %v248_v22 = vmul.f32 0.0625, %v97_v46  ;;  %v249_v23 = vmul.f32 0.0625, %v100_v38  ;;  %v358_v54 = vmul.f32 %v1547_v31, %v1547_v31  ;;  %v359_v12 = vmul.f32 %v1550_v9, %v1550_v9 }
  0xa3   :  { %v1559_v0 = vsub.f32 %v1179_v16, %v248_v22  ;;  %v1562_v13 = vsub.f32 %v1184_v17, %v249_v23  ;;  %v426_v62 = vsel %vm70_vm0, %v358_v54, 0.0  ;;  %v429_v8 = vsel %vm70_vm0, %v359_v12, 0.0 }
  0xa4   :  { %424 = vadd.xlane.f32.xlu1 %v423_v47  ;;  %427 = vadd.xlane.f32.xlu0 %v426_v62  ;;  %v103_v1 = vpop.xlane.xlu0 %102  ;;  %v106_v15 = vpop.xlane.xlu1 %105 }
  0xa5   :  { %v250_v30 = vmul.f32 0.0625, %v103_v1  ;;  %v251_v46 = vmul.f32 0.0625, %v106_v15  ;;  %v360_v38 = vmul.f32 %v1559_v0, %v1559_v0  ;;  %v361_v16 = vmul.f32 %v1562_v13, %v1562_v13 }
  0xa7   :  { %v1571_v22 = vsub.f32 %v1193_v20, %v250_v30  ;;  %v1574_v17 = vsub.f32 %v1198_v21, %v251_v46  ;;  %v432_v47 = vsel %vm70_vm0, %v360_v38, 0.0  ;;  %v435_v12 = vsel %vm70_vm0, %v361_v16, 0.0 }
  0xa8   :  { %430 = vadd.xlane.f32.xlu1 %v429_v8  ;;  %433 = vadd.xlane.f32.xlu0 %v432_v47  ;;  %v109_v23 = vpop.xlane.xlu0 %108  ;;  %v112_v54 = vpop.xlane.xlu1 %111 }
  0xa9   :  { %v252_v62 = vmul.f32 0.0625, %v109_v23  ;;  %v253_v1 = vmul.f32 0.0625, %v112_v54  ;;  %v362_v15 = vmul.f32 %v1571_v22, %v1571_v22  ;;  %v363_v20 = vmul.f32 %v1574_v17, %v1574_v17 }
  0xab   :  { %v1583_v30 = vsub.f32 %v1207_v24, %v252_v62  ;;  %v1586_v21 = vsub.f32 %v1212_v25, %v253_v1  ;;  %v438_v8 = vsel %vm70_vm0, %v362_v15, 0.0  ;;  %v441_v16 = vsel %vm70_vm0, %v363_v20, 0.0 }
  0xac   :  { %436 = vadd.xlane.f32.xlu1 %v435_v12  ;;  %439 = vadd.xlane.f32.xlu0 %v438_v8  ;;  %v115_v46 = vpop.xlane.xlu0 %114  ;;  %v118_v38 = vpop.xlane.xlu1 %117 }
  0xad   :  { %v254_v47 = vmul.f32 0.0625, %v115_v46  ;;  %v255_v23 = vmul.f32 0.0625, %v118_v38  ;;  %v364_v54 = vmul.f32 %v1583_v30, %v1583_v30  ;;  %v365_v24 = vmul.f32 %v1586_v21, %v1586_v21 }
  0xaf   :  { %v1595_v62 = vsub.f32 %v1221_v28, %v254_v47  ;;  %v1598_v25 = vsub.f32 %v1226_v29, %v255_v23  ;;  %v444_v12 = vsel %vm70_vm0, %v364_v54, 0.0  ;;  %v447_v20 = vsel %vm70_vm0, %v365_v24, 0.0 }
  0xb0   :  { %442 = vadd.xlane.f32.xlu1 %v441_v16  ;;  %445 = vadd.xlane.f32.xlu0 %v444_v12  ;;  %v121_v1 = vpop.xlane.xlu0 %120  ;;  %v124_v15 = vpop.xlane.xlu1 %123 }
  0xb1   :  { %v256_v8 = vmul.f32 0.0625, %v121_v1  ;;  %v257_v46 = vmul.f32 0.0625, %v124_v15  ;;  %v366_v38 = vmul.f32 %v1595_v62, %v1595_v62  ;;  %v367_v28 = vmul.f32 %v1598_v25, %v1598_v25 }
  0xb3   :  { %v1607_v47 = vsub.f32 %v1235_v32, %v256_v8  ;;  %v1610_v29 = vsub.f32 %v1240_v33, %v257_v46  ;;  %v450_v16 = vsel %vm70_vm0, %v366_v38, 0.0  ;;  %v453_v24 = vsel %vm70_vm0, %v367_v28, 0.0 }
  0xb4   :  { %448 = vadd.xlane.f32.xlu1 %v447_v20  ;;  %451 = vadd.xlane.f32.xlu0 %v450_v16  ;;  %v127_v23 = vpop.xlane.xlu0 %126  ;;  %v130_v54 = vpop.xlane.xlu1 %129 }
  0xb5   :  { %v258_v12 = vmul.f32 0.0625, %v127_v23  ;;  %v259_v1 = vmul.f32 0.0625, %v130_v54  ;;  %v368_v15 = vmul.f32 %v1607_v47, %v1607_v47  ;;  %v369_v32 = vmul.f32 %v1610_v29, %v1610_v29 }
  0xb7   :  { %v1619_v8 = vsub.f32 %v1249_v36, %v258_v12  ;;  %v1622_v33 = vsub.f32 %v1254_v37, %v259_v1  ;;  %v456_v20 = vsel %vm70_vm0, %v368_v15, 0.0  ;;  %v459_v28 = vsel %vm70_vm0, %v369_v32, 0.0 }
  0xb8   :  { %454 = vadd.xlane.f32.xlu1 %v453_v24  ;;  %457 = vadd.xlane.f32.xlu0 %v456_v20  ;;  %v133_v46 = vpop.xlane.xlu0 %132  ;;  %v136_v38 = vpop.xlane.xlu1 %135 }
  0xb9   :  { %v260_v16 = vmul.f32 0.0625, %v133_v46  ;;  %v261_v23 = vmul.f32 0.0625, %v136_v38  ;;  %v370_v54 = vmul.f32 %v1619_v8, %v1619_v8  ;;  %v371_v36 = vmul.f32 %v1622_v33, %v1622_v33 }
  0xbb   :  { %v1631_v12 = vsub.f32 %v1263_v40, %v260_v16  ;;  %v1634_v37 = vsub.f32 %v1268_v41, %v261_v23  ;;  %v462_v24 = vsel %vm70_vm0, %v370_v54, 0.0  ;;  %v465_v32 = vsel %vm70_vm0, %v371_v36, 0.0 }
  0xbc   :  { %460 = vadd.xlane.f32.xlu1 %v459_v28  ;;  %463 = vadd.xlane.f32.xlu0 %v462_v24  ;;  %v139_v1 = vpop.xlane.xlu0 %138  ;;  %v142_v15 = vpop.xlane.xlu1 %141 }
  0xbd   :  { %v262_v20 = vmul.f32 0.0625, %v139_v1  ;;  %v263_v46 = vmul.f32 0.0625, %v142_v15  ;;  %v372_v38 = vmul.f32 %v1631_v12, %v1631_v12  ;;  %v373_v40 = vmul.f32 %v1634_v37, %v1634_v37 }
  0xbf   :  { %v1643_v16 = vsub.f32 %v1277_v44, %v262_v20  ;;  %v1646_v41 = vsub.f32 %v1282_v45, %v263_v46  ;;  %v468_v28 = vsel %vm70_vm0, %v372_v38, 0.0  ;;  %v471_v36 = vsel %vm70_vm0, %v373_v40, 0.0 }
  0xc0   :  { %466 = vadd.xlane.f32.xlu1 %v465_v32  ;;  %469 = vadd.xlane.f32.xlu0 %v468_v28  ;;  %v145_v23 = vpop.xlane.xlu0 %144  ;;  %v148_v54 = vpop.xlane.xlu1 %147 }
  0xc1   :  { %v264_v24 = vmul.f32 0.0625, %v145_v23  ;;  %v265_v1 = vmul.f32 0.0625, %v148_v54  ;;  %v374_v15 = vmul.f32 %v1643_v16, %v1643_v16  ;;  %v375_v44 = vmul.f32 %v1646_v41, %v1646_v41 }
  0xc3   :  { %v1655_v20 = vsub.f32 %v1291_v48, %v264_v24  ;;  %v1658_v45 = vsub.f32 %v1296_v49, %v265_v1  ;;  %v474_v32 = vsel %vm70_vm0, %v374_v15, 0.0  ;;  %v477_v40 = vsel %vm70_vm0, %v375_v44, 0.0 }
  0xc4   :  { %472 = vadd.xlane.f32.xlu1 %v471_v36  ;;  %475 = vadd.xlane.f32.xlu0 %v474_v32  ;;  %v151_v46 = vpop.xlane.xlu0 %150  ;;  %v154_v38 = vpop.xlane.xlu1 %153 }
  0xc5   :  { %v266_v28 = vmul.f32 0.0625, %v151_v46  ;;  %v267_v23 = vmul.f32 0.0625, %v154_v38  ;;  %v376_v54 = vmul.f32 %v1655_v20, %v1655_v20  ;;  %v377_v48 = vmul.f32 %v1658_v45, %v1658_v45 }
  0xc7   :  { %v1667_v24 = vsub.f32 %v1305_v52, %v266_v28  ;;  %v1670_v49 = vsub.f32 %v1310_v53, %v267_v23  ;;  %v480_v36 = vsel %vm70_vm0, %v376_v54, 0.0  ;;  %v483_v44 = vsel %vm70_vm0, %v377_v48, 0.0 }
  0xc8   :  { %478 = vadd.xlane.f32.xlu1 %v477_v40  ;;  %481 = vadd.xlane.f32.xlu0 %v480_v36  ;;  %v157_v1 = vpop.xlane.xlu0 %156  ;;  %v160_v15 = vpop.xlane.xlu1 %159 }
  0xc9   :  { %v268_v32 = vmul.f32 0.0625, %v157_v1  ;;  %v269_v46 = vmul.f32 0.0625, %v160_v15  ;;  %v378_v38 = vmul.f32 %v1667_v24, %v1667_v24  ;;  %v379_v52 = vmul.f32 %v1670_v49, %v1670_v49 }
  0xcb   :  { %v1679_v28 = vsub.f32 %v1319_v56, %v268_v32  ;;  %v1682_v53 = vsub.f32 %v1324_v57, %v269_v46  ;;  %v486_v40 = vsel %vm70_vm0, %v378_v38, 0.0  ;;  %v489_v48 = vsel %vm70_vm0, %v379_v52, 0.0 }
  0xcc   :  { %484 = vadd.xlane.f32.xlu1 %v483_v44  ;;  %487 = vadd.xlane.f32.xlu0 %v486_v40  ;;  %v163_v23 = vpop.xlane.xlu0 %162  ;;  %v166_v54 = vpop.xlane.xlu1 %165 }
  0xcd   :  { %v270_v36 = vmul.f32 0.0625, %v163_v23  ;;  %v271_v1 = vmul.f32 0.0625, %v166_v54  ;;  %v380_v15 = vmul.f32 %v1679_v28, %v1679_v28  ;;  %v381_v56 = vmul.f32 %v1682_v53, %v1682_v53 }
  0xcf   :  { %v1691_v32 = vsub.f32 %v1333_v60, %v270_v36  ;;  %v1694_v57 = vsub.f32 %v1338_v61, %v271_v1  ;;  %v492_v44 = vsel %vm70_vm0, %v380_v15, 0.0  ;;  %v495_v52 = vsel %vm70_vm0, %v381_v56, 0.0 }
  0xd0   :  { %490 = vadd.xlane.f32.xlu1 %v489_v48  ;;  %493 = vadd.xlane.f32.xlu0 %v492_v44  ;;  %v169_v46 = vpop.xlane.xlu0 %168  ;;  %v172_v38 = vpop.xlane.xlu1 %171 }
  0xd1   :  { %v272_v40 = vmul.f32 0.0625, %v169_v46  ;;  %v273_v23 = vmul.f32 0.0625, %v172_v38  ;;  %v382_v54 = vmul.f32 %v1691_v32, %v1691_v32  ;;  %v383_v60 = vmul.f32 %v1694_v57, %v1694_v57 }
  0xd3   :  { %v1703_v36 = vsub.f32 %v1347_v3, %v272_v40  ;;  %v1706_v61 = vsub.f32 %v1352_v4, %v273_v23  ;;  %v498_v48 = vsel %vm70_vm0, %v382_v54, 0.0  ;;  %v501_v56 = vsel %vm70_vm0, %v383_v60, 0.0 }
  0xd4   :  { %496 = vadd.xlane.f32.xlu1 %v495_v52  ;;  %499 = vadd.xlane.f32.xlu0 %v498_v48  ;;  %v175_v1 = vpop.xlane.xlu0 %174  ;;  %v178_v15 = vpop.xlane.xlu1 %177 }
  0xd5   :  { %v274_v44 = vmul.f32 0.0625, %v175_v1  ;;  %v275_v46 = vmul.f32 0.0625, %v178_v15  ;;  %v384_v38 = vmul.f32 %v1703_v36, %v1703_v36  ;;  %v385_v3 = vmul.f32 %v1706_v61, %v1706_v61 }
  0xd7   :  { %v1715_v40 = vsub.f32 %v1361_v10, %v274_v44  ;;  %v1718_v4 = vsub.f32 %v1366_v11, %v275_v46  ;;  %v504_v52 = vsel %vm70_vm0, %v384_v38, 0.0  ;;  %v507_v60 = vsel %vm70_vm0, %v385_v3, 0.0 }
  0xd8   :  { %502 = vadd.xlane.f32.xlu1 %v501_v56  ;;  %505 = vadd.xlane.f32.xlu0 %v504_v52  ;;  %v181_v23 = vpop.xlane.xlu0 %180  ;;  %v184_v54 = vpop.xlane.xlu1 %183 }
  0xd9   :  { %v276_v48 = vmul.f32 0.0625, %v181_v23  ;;  %v277_v1 = vmul.f32 0.0625, %v184_v54  ;;  %v386_v15 = vmul.f32 %v1715_v40, %v1715_v40  ;;  %v387_v10 = vmul.f32 %v1718_v4, %v1718_v4 }
  0xdb   :  { %v1727_v44 = vsub.f32 %v1375_v18, %v276_v48  ;;  %v1730_v11 = vsub.f32 %v1380_v19, %v277_v1  ;;  %v510_v56 = vsel %vm70_vm0, %v386_v15, 0.0  ;;  %v513_v3 = vsel %vm70_vm0, %v387_v10, 0.0 }
  0xdc   :  { %508 = vadd.xlane.f32.xlu1 %v507_v60  ;;  %511 = vadd.xlane.f32.xlu0 %v510_v56  ;;  %v187_v46 = vpop.xlane.xlu0 %186  ;;  %v190_v38 = vpop.xlane.xlu1 %189 }
  0xdd   :  { %v278_v52 = vmul.f32 0.0625, %v187_v46  ;;  %v279_v23 = vmul.f32 0.0625, %v190_v38  ;;  %v388_v54 = vmul.f32 %v1727_v44, %v1727_v44  ;;  %v389_v18 = vmul.f32 %v1730_v11, %v1730_v11 }
  0xdf   :  { %v1739_v48 = vsub.f32 %v1389_v26, %v278_v52  ;;  %v1742_v19 = vsub.f32 %v1394_v27, %v279_v23  ;;  %v516_v60 = vsel %vm70_vm0, %v388_v54, 0.0  ;;  %v519_v10 = vsel %vm70_vm0, %v389_v18, 0.0 }
  0xe0   :  { %514 = vadd.xlane.f32.xlu1 %v513_v3  ;;  %517 = vadd.xlane.f32.xlu0 %v516_v60  ;;  %v193_v1 = vpop.xlane.xlu0 %192  ;;  %v196_v15 = vpop.xlane.xlu1 %195 }
  0xe1   :  { %v280_v56 = vmul.f32 0.0625, %v193_v1  ;;  %v281_v46 = vmul.f32 0.0625, %v196_v15  ;;  %v390_v38 = vmul.f32 %v1739_v48, %v1739_v48  ;;  %v391_v26 = vmul.f32 %v1742_v19, %v1742_v19 }
  0xe3   :  { %v1751_v52 = vsub.f32 %v1403_v34, %v280_v56  ;;  %v1754_v27 = vsub.f32 %v1408_v35, %v281_v46  ;;  %v522_v3 = vsel %vm70_vm0, %v390_v38, 0.0  ;;  %v525_v18 = vsel %vm70_vm0, %v391_v26, 0.0 }
  0xe4   :  { %520 = vadd.xlane.f32.xlu1 %v519_v10  ;;  %523 = vadd.xlane.f32.xlu0 %v522_v3  ;;  %v199_v23 = vpop.xlane.xlu0 %198  ;;  %v202_v54 = vpop.xlane.xlu1 %201 }
  0xe5   :  { %v282_v60 = vmul.f32 0.0625, %v199_v23  ;;  %v283_v1 = vmul.f32 0.0625, %v202_v54  ;;  %v392_v15 = vmul.f32 %v1751_v52, %v1751_v52  ;;  %v393_v34 = vmul.f32 %v1754_v27, %v1754_v27 }
  0xe7   :  { %v1763_v56 = vsub.f32 %v1417_v42, %v282_v60  ;;  %v1766_v35 = vsub.f32 %v1422_v43, %v283_v1  ;;  %v528_v10 = vsel %vm70_vm0, %v392_v15, 0.0  ;;  %v531_v26 = vsel %vm70_vm0, %v393_v34, 0.0 }
  0xe8   :  { %526 = vadd.xlane.f32.xlu1 %v525_v18  ;;  %529 = vadd.xlane.f32.xlu0 %v528_v10  ;;  %v205_v46 = vpop.xlane.xlu0 %204  ;;  %v208_v38 = vpop.xlane.xlu1 %207 }
  0xe9   :  { %v284_v3 = vmul.f32 0.0625, %v205_v46  ;;  %v285_v23 = vmul.f32 0.0625, %v208_v38  ;;  %v394_v54 = vmul.f32 %v1763_v56, %v1763_v56  ;;  %v395_v42 = vmul.f32 %v1766_v35, %v1766_v35 }
  0xeb   :  { %v1775_v60 = vsub.f32 %v1431_v50, %v284_v3  ;;  %v1778_v43 = vsub.f32 %v1436_v51, %v285_v23  ;;  %v534_v18 = vsel %vm70_vm0, %v394_v54, 0.0  ;;  %v537_v34 = vsel %vm70_vm0, %v395_v42, 0.0 }
  0xec   :  { %532 = vadd.xlane.f32.xlu1 %v531_v26  ;;  %535 = vadd.xlane.f32.xlu0 %v534_v18  ;;  %v211_v1 = vpop.xlane.xlu0 %210  ;;  %v214_v15 = vpop.xlane.xlu1 %213 }
  0xed   :  { %2277 = vst [vmem:[#allocation8_spill] sm:$0xff] %v1778_v43  ;;  %v286_v10 = vmul.f32 0.0625, %v211_v1  ;;  %v287_v46 = vmul.f32 0.0625, %v214_v15  ;;  %v396_v38 = vmul.f32 %v1775_v60, %v1775_v60  ;;  %v397_v50 = vmul.f32 %v1778_v43, %v1778_v43 }
  0xef   :  { %v1787_v3 = vsub.f32 %v1445_v58, %v286_v10  ;;  %v1790_v51 = vsub.f32 %v1450_v59, %v287_v46  ;;  %v540_v26 = vsel %vm70_vm0, %v396_v38, 0.0  ;;  %v543_v42 = vsel %vm70_vm0, %v397_v50, 0.0 }
  0xf0   :  { %538 = vadd.xlane.f32.xlu1 %v537_v34  ;;  %541 = vadd.xlane.f32.xlu0 %v540_v26  ;;  %v217_v23 = vpop.xlane.xlu0 %216  ;;  %v220_v54 = vpop.xlane.xlu1 %219 }
  0xf1   :  { %2278 = vst [vmem:[#allocation9_spill] sm:$0xff] %v1787_v3  ;;  %2279 = vst [vmem:[#allocation10_spill] sm:$0xff] %v1790_v51  ;;  %v288_v18 = vmul.f32 0.0625, %v217_v23  ;;  %v289_v1 = vmul.f32 0.0625, %v220_v54  ;;  %v398_v15 = vmul.f32 %v1787_v3, %v1787_v3  ;;  %v399_v58 = vmul.f32 %v1790_v51, %v1790_v51 }
  0xf3   :  { %v1799_v10 = vsub.f32 %v1459_v6, %v288_v18  ;;  %v1802_v59 = vsub.f32 %v1464_v7, %v289_v1  ;;  %v546_v34 = vsel %vm70_vm0, %v398_v15, 0.0  ;;  %v549_v50 = vsel %vm70_vm0, %v399_v58, 0.0  ;;  %v2282_v18 = vld [vmem:[#allocation2_spill] sm:$0xff]  ;;  %v2284_v7 = vld [vmem:[#allocation3_spill] sm:$0xff] }
  0xf4   :  { %544 = vadd.xlane.f32.xlu1 %v543_v42  ;;  %547 = vadd.xlane.f32.xlu0 %v546_v34  ;;  %v223_v46 = vpop.xlane.xlu0 %222  ;;  %v226_v38 = vpop.xlane.xlu1 %225 }
  0xf5   :  { %2280 = vst [vmem:[#allocation11_spill] sm:$0xff] %v1799_v10  ;;  %2281 = vst [vmem:[#allocation12_spill] sm:$0xff] %v1802_v59  ;;  %v290_v26 = vmul.f32 0.0625, %v223_v46  ;;  %v291_v23 = vmul.f32 0.0625, %v226_v38  ;;  %v400_v54 = vmul.f32 %v1799_v10, %v1799_v10  ;;  %v401_v6 = vmul.f32 %v1802_v59, %v1802_v59 }
  0xf7   :  { %v1811_v51 = vsub.f32 %v2282_v18, %v290_v26  ;;  %v1814_v1 = vsub.f32 %v2284_v7, %v291_v23  ;;  %v552_v42 = vsel %vm70_vm0, %v400_v54, 0.0  ;;  %v555_v34 = vsel %vm70_vm0, %v401_v6, 0.0  ;;  %v2286_v18 = vld [vmem:[#allocation4_spill] sm:$0xff]  ;;  %v2288_v23 = vld [vmem:[#allocation5_spill] sm:$0xff] }
  0xf8   :  { %550 = vadd.xlane.f32.xlu1 %v549_v50  ;;  %553 = vadd.xlane.f32.xlu0 %v552_v42  ;;  %v229_v15 = vpop.xlane.xlu0 %228  ;;  %v232_v58 = vpop.xlane.xlu1 %231 }
  0xf9   :  { %2283 = vst [vmem:[#allocation2_spill] sm:$0xff] %v1811_v51  ;;  %2285 = vst [vmem:[#allocation3_spill] sm:$0xff] %v1814_v1  ;;  %v292_v46 = vmul.f32 0.0625, %v229_v15  ;;  %v293_v38 = vmul.f32 0.0625, %v232_v58  ;;  %v402_v10 = vmul.f32 %v1811_v51, %v1811_v51  ;;  %v403_v26 = vmul.f32 %v1814_v1, %v1814_v1 }
  0xfb   :  { %v1823_v59 = vsub.f32 %v2286_v18, %v292_v46  ;;  %v1826_v7 = vsub.f32 %v2288_v23, %v293_v38  ;;  %v558_v50 = vsel %vm70_vm0, %v402_v10, 0.0  ;;  %v561_v42 = vsel %vm70_vm0, %v403_v26, 0.0  ;;  %v2290_v18 = vld [vmem:[#allocation6_spill] sm:$0xff] }
  0xfc   :  { %556 = vadd.xlane.f32.xlu1 %v555_v34  ;;  %559 = vadd.xlane.f32.xlu0 %v558_v50  ;;  %v235_v54 = vpop.xlane.xlu0 %234  ;;  %v238_v6 = vpop.xlane.xlu1 %237 }
  0xfd   :  { %2287 = vst [vmem:[#allocation4_spill] sm:$0xff] %v1823_v59  ;;  %2289 = vst [vmem:[#allocation5_spill] sm:$0xff] %v1826_v7  ;;  %v294_v15 = vmul.f32 0.0625, %v235_v54  ;;  %v295_v58 = vmul.f32 0.0625, %v238_v6  ;;  %v404_v51 = vmul.f32 %v1823_v59, %v1823_v59  ;;  %v405_v46 = vmul.f32 %v1826_v7, %v1826_v7 }
  0xff   :  { %v1835_v1 = vsub.f32 %v2290_v18, %v294_v15  ;;  %v1838_v38 = vsub.f32 %v1506_v55, %v295_v58  ;;  %v564_v10 = vsel %vm70_vm0, %v404_v51, 0.0  ;;  %v567_v34 = vsel %vm70_vm0, %v405_v46, 0.0 }
 0x100   :  { %562 = vadd.xlane.f32.xlu1 %v561_v42  ;;  %565 = vadd.xlane.f32.xlu0 %v564_v10 }
 0x101   :  { %2291 = vst [vmem:[#allocation6_spill] sm:$0xff] %v1835_v1  ;;  %2292 = vst [vmem:[#allocation13_spill] sm:$0xff] %v1838_v38  ;;  %v406_v26 = vmul.f32 %v1835_v1, %v1835_v1  ;;  %v407_v23 = vmul.f32 %v1838_v38, %v1838_v38 }
 0x103   :  { %v570_v50 = vsel %vm70_vm0, %v406_v26, 0.0  ;;  %v573_v54 = vsel %vm70_vm0, %v407_v23, 0.0 }
 0x104   :  { %568 = vadd.xlane.f32.xlu1 %v567_v34  ;;  %571 = vadd.xlane.f32.xlu0 %v570_v50 }
 0x108   :  { %574 = vadd.xlane.f32.xlu1 %v573_v54 }
 0x125   :  { %v410_v55 = vpop.xlane.xlu0 %409 }
 0x126   :  { %v576_v6 = vmul.f32 0.0625, %v410_v55 }
 0x128   :  { %v632_v51 = vadd.f32 1e-05, %v576_v6 }
 0x129   :  { %v413_v42 = vpop.xlane.xlu1 %412  ;;  %v416_v15 = vpop.xlane.xlu0 %415 }
 0x12a   :  { %988 = vrsqrt.f32 %v632_v51  ;;  %v577_v58 = vmul.f32 0.0625, %v413_v42  ;;  %v578_v46 = vmul.f32 0.0625, %v416_v15  ;;  %v1851_v51 = vld [vmem:[%s2251_s1] ss:$0 sm:$0xff] }
 0x12c   :  { %v633_v18 = vadd.f32 1e-05, %v577_v58  ;;  %v634_v10 = vadd.f32 1e-05, %v578_v46 }
 0x12d   :  { %v419_v1 = vpop.xlane.xlu1 %418  ;;  %v422_v7 = vpop.xlane.xlu0 %421 }
 0x12e   :  { %990 = vrsqrt.f32 %v633_v18  ;;  %v579_v38 = vmul.f32 0.0625, %v419_v1  ;;  %v580_v26 = vmul.f32 0.0625, %v422_v7 }
 0x12f   :  { %992 = vrsqrt.f32 %v634_v10 }
 0x130   :  { %v635_v34 = vadd.f32 1e-05, %v579_v38  ;;  %v636_v50 = vadd.f32 1e-05, %v580_v26  ;;  %v1857_v38 = vld [vmem:[%s2252_s2] ss:$0 sm:$0xff] }
 0x131   :  { %v425_v23 = vpop.xlane.xlu1 %424  ;;  %v428_v54 = vpop.xlane.xlu0 %427 }
 0x132   :  { %994 = vrsqrt.f32 %v635_v34  ;;  %v581_v55 = vmul.f32 0.0625, %v425_v23  ;;  %v582_v6 = vmul.f32 0.0625, %v428_v54 }
 0x133   :  { %996 = vrsqrt.f32 %v636_v50 }
 0x134   :  { %v989_v59 = vpop.eup %988  ;;  %v637_v42 = vadd.f32 1e-05, %v581_v55  ;;  %v638_v15 = vadd.f32 1e-05, %v582_v6  ;;  %v2293_v6 = vld [vmem:[#allocation7_spill] sm:$0xff] }
 0x135   :  { %v744_v1 = vmul.f32 %v989_v59, %v1513_v39  ;;  %v431_v7 = vpop.xlane.xlu1 %430  ;;  %v434_v58 = vpop.xlane.xlu0 %433 }
 0x136   :  { %998 = vrsqrt.f32 %v637_v42  ;;  %v583_v46 = vmul.f32 0.0625, %v431_v7  ;;  %v584_v18 = vmul.f32 0.0625, %v434_v58 }
 0x137   :  { %v807_v10 = vmul.f32 %v1851_v51, %v744_v1  ;;  %1000 = vrsqrt.f32 %v638_v15 }
 0x138   :  { %v991_v26 = vpop.eup %990  ;;  %v639_v34 = vadd.f32 1e-05, %v583_v46  ;;  %v640_v50 = vadd.f32 1e-05, %v584_v18 }
 0x139   :  { %v993_v23 = vpop.eup %992  ;;  %v870_v54 = vadd.f32 %v1857_v38, %v807_v10  ;;  %v745_v39 = vmul.f32 %v991_v26, %v1523_v63  ;;  %v437_v59 = vpop.xlane.xlu1 %436 }
 0x13a   :  { %v440_v55 = vpop.xlane.xlu0 %439  ;;  %v746_v3 = vmul.f32 %v993_v23, %v2293_v6  ;;  %1002 = vrsqrt.f32 %v639_v34  ;;  %v585_v43 = vmul.f32 0.0625, %v437_v59 }
 0x13b   :  { %v586_v42 = vmul.f32 0.0625, %v440_v55  ;;  %926 = vst.msk [vmem:[%s2253_s3] sm:$0xff] %vm70_vm0, %v870_v54  ;;  %v808_v15 = vmul.f32 %v1851_v51, %v745_v39  ;;  %1004 = vrsqrt.f32 %v640_v50 }
 0x13c   :  { %v995_v1 = vpop.eup %994  ;;  %v809_v7 = vmul.f32 %v1851_v51, %v746_v3  ;;  %v641_v58 = vadd.f32 1e-05, %v585_v43 }
 0x13d   :  { %v642_v63 = vadd.f32 1e-05, %v586_v42  ;;  %v997_v46 = vpop.eup %996  ;;  %v871_v18 = vadd.f32 %v1857_v38, %v808_v15  ;;  %v747_v10 = vmul.f32 %v995_v1, %v1526_v14  ;;  %v443_v26 = vpop.xlane.xlu1 %442 }
 0x13e   :  { %v446_v34 = vpop.xlane.xlu0 %445  ;;  %v872_v23 = vadd.f32 %v1857_v38, %v809_v7  ;;  %v748_v59 = vmul.f32 %v997_v46, %v1535_v2  ;;  %1006 = vrsqrt.f32 %v641_v58  ;;  %v587_v54 = vmul.f32 0.0625, %v443_v26 }
 0x13f   :  { %927 = vst.msk [vmem:[%s2253_s3 + $0x8] sm:$0xff] %vm70_vm0, %v871_v18  ;;  %v810_v43 = vmul.f32 %v1851_v51, %v747_v10  ;;  %1008 = vrsqrt.f32 %v642_v63  ;;  %v588_v3 = vmul.f32 0.0625, %v446_v34 }
 0x140   :  { %v999_v50 = vpop.eup %998  ;;  %928 = vst.msk [vmem:[%s2253_s3 + $0x10] sm:$0xff] %vm70_vm0, %v872_v23  ;;  %v811_v14 = vmul.f32 %v1851_v51, %v748_v59  ;;  %v643_v2 = vadd.f32 1e-05, %v587_v54 }
 0x141   :  { %v1001_v39 = vpop.eup %1000  ;;  %v873_v55 = vadd.f32 %v1857_v38, %v810_v43  ;;  %v749_v6 = vmul.f32 %v999_v50, %v1538_v5  ;;  %v644_v42 = vadd.f32 1e-05, %v588_v3  ;;  %v449_v15 = vpop.xlane.xlu1 %448 }
 0x142   :  { %v452_v1 = vpop.xlane.xlu0 %451  ;;  %v874_v7 = vadd.f32 %v1857_v38, %v811_v14  ;;  %v750_v58 = vmul.f32 %v1001_v39, %v1547_v31  ;;  %1010 = vrsqrt.f32 %v643_v2  ;;  %v589_v63 = vmul.f32 0.0625, %v449_v15 }
 0x143   :  { %929 = vst.msk [vmem:[%s2253_s3 + $0x18] sm:$0xff] %vm70_vm0, %v873_v55  ;;  %v812_v46 = vmul.f32 %v1851_v51, %v749_v6  ;;  %1012 = vrsqrt.f32 %v644_v42  ;;  %v590_v18 = vmul.f32 0.0625, %v452_v1 }
 0x144   :  { %v1003_v10 = vpop.eup %1002  ;;  %930 = vst.msk [vmem:[%s2253_s3 + $0x20] sm:$0xff] %vm70_vm0, %v874_v7  ;;  %v813_v5 = vmul.f32 %v1851_v51, %v750_v58  ;;  %v645_v31 = vadd.f32 1e-05, %v589_v63 }
 0x145   :  { %v1005_v26 = vpop.eup %1004  ;;  %v875_v34 = vadd.f32 %v1857_v38, %v812_v46  ;;  %v751_v23 = vmul.f32 %v1003_v10, %v1550_v9  ;;  %v646_v59 = vadd.f32 1e-05, %v590_v18  ;;  %v455_v54 = vpop.xlane.xlu1 %454 }
 0x146   :  { %v458_v43 = vpop.xlane.xlu0 %457  ;;  %v876_v3 = vadd.f32 %v1857_v38, %v813_v5  ;;  %v752_v50 = vmul.f32 %v1005_v26, %v1559_v0  ;;  %1014 = vrsqrt.f32 %v645_v31  ;;  %v591_v14 = vmul.f32 0.0625, %v455_v54 }
 0x147   :  { %931 = vst.msk [vmem:[%s2253_s3 + $0x28] sm:$0xff] %vm70_vm0, %v875_v34  ;;  %v814_v2 = vmul.f32 %v1851_v51, %v751_v23  ;;  %1016 = vrsqrt.f32 %v646_v59  ;;  %v592_v39 = vmul.f32 0.0625, %v458_v43 }
 0x148   :  { %v1007_v55 = vpop.eup %1006  ;;  %932 = vst.msk [vmem:[%s2253_s3 + $0x30] sm:$0xff] %vm70_vm0, %v876_v3  ;;  %v815_v9 = vmul.f32 %v1851_v51, %v752_v50  ;;  %v647_v0 = vadd.f32 1e-05, %v591_v14 }
 0x149   :  { %v1009_v6 = vpop.eup %1008  ;;  %v877_v42 = vadd.f32 %v1857_v38, %v814_v2  ;;  %v753_v15 = vmul.f32 %v1007_v55, %v1562_v13  ;;  %v648_v1 = vadd.f32 1e-05, %v592_v39  ;;  %v461_v7 = vpop.xlane.xlu1 %460 }
 0x14a   :  { %v464_v58 = vpop.xlane.xlu0 %463  ;;  %v878_v63 = vadd.f32 %v1857_v38, %v815_v9  ;;  %v754_v46 = vmul.f32 %v1009_v6, %v1571_v22  ;;  %1018 = vrsqrt.f32 %v647_v0  ;;  %v593_v18 = vmul.f32 0.0625, %v461_v7 }
 0x14b   :  { %933 = vst.msk [vmem:[%s2253_s3 + $0x38] sm:$0xff] %vm70_vm0, %v877_v42  ;;  %v816_v10 = vmul.f32 %v1851_v51, %v753_v15  ;;  %1020 = vrsqrt.f32 %v648_v1  ;;  %v594_v5 = vmul.f32 0.0625, %v464_v58 }
 0x14c   :  { %v1011_v31 = vpop.eup %1010  ;;  %934 = vst.msk [vmem:[%s2253_s3 + $0x40] sm:$0xff] %vm70_vm0, %v878_v63  ;;  %v817_v13 = vmul.f32 %v1851_v51, %v754_v46  ;;  %v649_v22 = vadd.f32 1e-05, %v593_v18 }
 0x14d   :  { %v1013_v26 = vpop.eup %1012  ;;  %v879_v34 = vadd.f32 %v1857_v38, %v816_v10  ;;  %v755_v23 = vmul.f32 %v1011_v31, %v1574_v17  ;;  %v650_v59 = vadd.f32 1e-05, %v594_v5  ;;  %v467_v54 = vpop.xlane.xlu1 %466 }
 0x14e   :  { %v470_v43 = vpop.xlane.xlu0 %469  ;;  %v880_v3 = vadd.f32 %v1857_v38, %v817_v13  ;;  %v756_v50 = vmul.f32 %v1013_v26, %v1583_v30  ;;  %1022 = vrsqrt.f32 %v649_v22  ;;  %v595_v14 = vmul.f32 0.0625, %v467_v54 }
 0x14f   :  { %935 = vst.msk [vmem:[%s2253_s3 + $0x48] sm:$0xff] %vm70_vm0, %v879_v34  ;;  %v818_v2 = vmul.f32 %v1851_v51, %v755_v23  ;;  %1024 = vrsqrt.f32 %v650_v59  ;;  %v596_v39 = vmul.f32 0.0625, %v470_v43 }
 0x150   :  { %v1015_v55 = vpop.eup %1014  ;;  %936 = vst.msk [vmem:[%s2253_s3 + $0x50] sm:$0xff] %vm70_vm0, %v880_v3  ;;  %v819_v17 = vmul.f32 %v1851_v51, %v756_v50  ;;  %v651_v30 = vadd.f32 1e-05, %v595_v14 }
 0x151   :  { %v1017_v9 = vpop.eup %1016  ;;  %v881_v0 = vadd.f32 %v1857_v38, %v818_v2  ;;  %v757_v6 = vmul.f32 %v1015_v55, %v1586_v21  ;;  %v652_v42 = vadd.f32 1e-05, %v596_v39  ;;  %v473_v15 = vpop.xlane.xlu1 %472 }
 0x152   :  { %v476_v1 = vpop.xlane.xlu0 %475  ;;  %v882_v7 = vadd.f32 %v1857_v38, %v819_v17  ;;  %v758_v58 = vmul.f32 %v1017_v9, %v1595_v62  ;;  %1026 = vrsqrt.f32 %v651_v30  ;;  %v597_v63 = vmul.f32 0.0625, %v473_v15 }
 0x153   :  { %937 = vst.msk [vmem:[%s2253_s3 + $0x58] sm:$0xff] %vm70_vm0, %v881_v0  ;;  %v820_v46 = vmul.f32 %v1851_v51, %v757_v6  ;;  %1028 = vrsqrt.f32 %v652_v42  ;;  %v598_v18 = vmul.f32 0.0625, %v476_v1 }
 0x154   :  { %v1019_v10 = vpop.eup %1018  ;;  %938 = vst.msk [vmem:[%s2253_s3 + $0x60] sm:$0xff] %vm70_vm0, %v882_v7  ;;  %v821_v21 = vmul.f32 %v1851_v51, %v758_v58  ;;  %v653_v62 = vadd.f32 1e-05, %v597_v63 }
 0x155   :  { %v1021_v5 = vpop.eup %1020  ;;  %v883_v31 = vadd.f32 %v1857_v38, %v820_v46  ;;  %v759_v13 = vmul.f32 %v1019_v10, %v1598_v25  ;;  %v654_v22 = vadd.f32 1e-05, %v598_v18  ;;  %v479_v26 = vpop.xlane.xlu1 %478 }
 0x156   :  { %v482_v34 = vpop.xlane.xlu0 %481  ;;  %v884_v23 = vadd.f32 %v1857_v38, %v821_v21  ;;  %v760_v59 = vmul.f32 %v1021_v5, %v1607_v47  ;;  %1030 = vrsqrt.f32 %v653_v62  ;;  %v599_v54 = vmul.f32 0.0625, %v479_v26 }
 0x157   :  { %939 = vst.msk [vmem:[%s2253_s3 + $0x68] sm:$0xff] %vm70_vm0, %v883_v31  ;;  %v822_v43 = vmul.f32 %v1851_v51, %v759_v13  ;;  %1032 = vrsqrt.f32 %v654_v22  ;;  %v600_v3 = vmul.f32 0.0625, %v482_v34 }
 0x158   :  { %v1023_v50 = vpop.eup %1022  ;;  %940 = vst.msk [vmem:[%s2253_s3 + $0x70] sm:$0xff] %vm70_vm0, %v884_v23  ;;  %v823_v25 = vmul.f32 %v1851_v51, %v760_v59  ;;  %v655_v47 = vadd.f32 1e-05, %v599_v54 }
 0x159   :  { %v1025_v14 = vpop.eup %1024  ;;  %v885_v2 = vadd.f32 %v1857_v38, %v822_v43  ;;  %v761_v39 = vmul.f32 %v1023_v50, %v1610_v29  ;;  %v656_v55 = vadd.f32 1e-05, %v600_v3  ;;  %v485_v17 = vpop.xlane.xlu1 %484 }
 0x15a   :  { %v488_v30 = vpop.xlane.xlu0 %487  ;;  %v886_v9 = vadd.f32 %v1857_v38, %v823_v25  ;;  %v762_v0 = vmul.f32 %v1025_v14, %v1619_v8  ;;  %1034 = vrsqrt.f32 %v655_v47  ;;  %v601_v6 = vmul.f32 0.0625, %v485_v17 }
 0x15b   :  { %941 = vst.msk [vmem:[%s2253_s3 + $0x78] sm:$0xff] %vm70_vm0, %v885_v2  ;;  %v824_v42 = vmul.f32 %v1851_v51, %v761_v39  ;;  %1036 = vrsqrt.f32 %v656_v55  ;;  %v602_v15 = vmul.f32 0.0625, %v488_v30 }
 0x15c   :  { %v1027_v1 = vpop.eup %1026  ;;  %942 = vst.msk [vmem:[%s2253_s3 + $0x80] sm:$0xff] %vm70_vm0, %v886_v9  ;;  %v825_v29 = vmul.f32 %v1851_v51, %v762_v0  ;;  %v657_v8 = vadd.f32 1e-05, %v601_v6 }
 0x15d   :  { %v1029_v7 = vpop.eup %1028  ;;  %v887_v58 = vadd.f32 %v1857_v38, %v824_v42  ;;  %v763_v63 = vmul.f32 %v1027_v1, %v1622_v33  ;;  %v658_v46 = vadd.f32 1e-05, %v602_v15  ;;  %v491_v18 = vpop.xlane.xlu1 %490 }
 0x15e   :  { %v494_v10 = vpop.xlane.xlu0 %493  ;;  %v888_v21 = vadd.f32 %v1857_v38, %v825_v29  ;;  %v764_v62 = vmul.f32 %v1029_v7, %v1631_v12  ;;  %1038 = vrsqrt.f32 %v657_v8  ;;  %v603_v5 = vmul.f32 0.0625, %v491_v18 }
 0x15f   :  { %943 = vst.msk [vmem:[%s2253_s3 + $0x88] sm:$0xff] %vm70_vm0, %v887_v58  ;;  %v826_v31 = vmul.f32 %v1851_v51, %v763_v63  ;;  %1040 = vrsqrt.f32 %v658_v46  ;;  %v604_v13 = vmul.f32 0.0625, %v494_v10 }
 0x160   :  { %v1031_v22 = vpop.eup %1030  ;;  %944 = vst.msk [vmem:[%s2253_s3 + $0x90] sm:$0xff] %vm70_vm0, %v888_v21  ;;  %v827_v33 = vmul.f32 %v1851_v51, %v764_v62  ;;  %v659_v12 = vadd.f32 1e-05, %v603_v5 }
 0x161   :  { %v1033_v26 = vpop.eup %1032  ;;  %v889_v34 = vadd.f32 %v1857_v38, %v826_v31  ;;  %v765_v23 = vmul.f32 %v1031_v22, %v1634_v37  ;;  %v660_v59 = vadd.f32 1e-05, %v604_v13  ;;  %v497_v54 = vpop.xlane.xlu1 %496 }
 0x162   :  { %v500_v43 = vpop.xlane.xlu0 %499  ;;  %v890_v3 = vadd.f32 %v1857_v38, %v827_v33  ;;  %v766_v50 = vmul.f32 %v1033_v26, %v1643_v16  ;;  %1042 = vrsqrt.f32 %v659_v12  ;;  %v605_v25 = vmul.f32 0.0625, %v497_v54 }
 0x163   :  { %945 = vst.msk [vmem:[%s2253_s3 + $0x98] sm:$0xff] %vm70_vm0, %v889_v34  ;;  %v828_v47 = vmul.f32 %v1851_v51, %v765_v23  ;;  %1044 = vrsqrt.f32 %v660_v59  ;;  %v606_v14 = vmul.f32 0.0625, %v500_v43 }
 0x164   :  { %v1035_v2 = vpop.eup %1034  ;;  %946 = vst.msk [vmem:[%s2253_s3 + $0xa0] sm:$0xff] %vm70_vm0, %v890_v3  ;;  %v829_v37 = vmul.f32 %v1851_v51, %v766_v50  ;;  %v661_v16 = vadd.f32 1e-05, %v605_v25 }
 0x165   :  { %v1037_v39 = vpop.eup %1036  ;;  %v891_v55 = vadd.f32 %v1857_v38, %v828_v47  ;;  %v767_v17 = vmul.f32 %v1035_v2, %v1646_v41  ;;  %v662_v30 = vadd.f32 1e-05, %v606_v14  ;;  %v503_v9 = vpop.xlane.xlu1 %502 }
 0x166   :  { %v506_v0 = vpop.xlane.xlu0 %505  ;;  %v892_v6 = vadd.f32 %v1857_v38, %v829_v37  ;;  %v768_v42 = vmul.f32 %v1037_v39, %v1655_v20  ;;  %1046 = vrsqrt.f32 %v661_v16  ;;  %v607_v15 = vmul.f32 0.0625, %v503_v9 }
 0x167   :  { %947 = vst.msk [vmem:[%s2253_s3 + $0xa8] sm:$0xff] %vm70_vm0, %v891_v55  ;;  %v830_v1 = vmul.f32 %v1851_v51, %v767_v17  ;;  %1048 = vrsqrt.f32 %v662_v30  ;;  %v608_v29 = vmul.f32 0.0625, %v506_v0 }
 0x168   :  { %v1039_v8 = vpop.eup %1038  ;;  %948 = vst.msk [vmem:[%s2253_s3 + $0xb0] sm:$0xff] %vm70_vm0, %v892_v6  ;;  %v831_v41 = vmul.f32 %v1851_v51, %v768_v42  ;;  %v663_v20 = vadd.f32 1e-05, %v607_v15 }
 0x169   :  { %v1041_v7 = vpop.eup %1040  ;;  %v893_v58 = vadd.f32 %v1857_v38, %v830_v1  ;;  %v769_v63 = vmul.f32 %v1039_v8, %v1658_v45  ;;  %v664_v46 = vadd.f32 1e-05, %v608_v29  ;;  %v509_v18 = vpop.xlane.xlu1 %508 }
 0x16a   :  { %v512_v10 = vpop.xlane.xlu0 %511  ;;  %v894_v21 = vadd.f32 %v1857_v38, %v831_v41  ;;  %v770_v62 = vmul.f32 %v1041_v7, %v1667_v24  ;;  %1050 = vrsqrt.f32 %v663_v20  ;;  %v609_v5 = vmul.f32 0.0625, %v509_v18 }
 0x16b   :  { %949 = vst.msk [vmem:[%s2253_s3 + $0xb8] sm:$0xff] %vm70_vm0, %v893_v58  ;;  %v832_v31 = vmul.f32 %v1851_v51, %v769_v63  ;;  %1052 = vrsqrt.f32 %v664_v46  ;;  %v610_v13 = vmul.f32 0.0625, %v512_v10 }
 0x16c   :  { %v1043_v22 = vpop.eup %1042  ;;  %950 = vst.msk [vmem:[%s2253_s3 + $0xc0] sm:$0xff] %vm70_vm0, %v894_v21  ;;  %v833_v45 = vmul.f32 %v1851_v51, %v770_v62  ;;  %v665_v24 = vadd.f32 1e-05, %v609_v5 }
 0x16d   :  { %v1045_v33 = vpop.eup %1044  ;;  %v895_v12 = vadd.f32 %v1857_v38, %v832_v31  ;;  %v771_v26 = vmul.f32 %v1043_v22, %v1670_v49  ;;  %v666_v34 = vadd.f32 1e-05, %v610_v13  ;;  %v515_v23 = vpop.xlane.xlu1 %514 }
 0x16e   :  { %v518_v59 = vpop.xlane.xlu0 %517  ;;  %v896_v54 = vadd.f32 %v1857_v38, %v833_v45  ;;  %v772_v43 = vmul.f32 %v1045_v33, %v1679_v28  ;;  %1054 = vrsqrt.f32 %v665_v24  ;;  %v611_v3 = vmul.f32 0.0625, %v515_v23 }
 0x16f   :  { %951 = vst.msk [vmem:[%s2253_s3 + $0xc8] sm:$0xff] %vm70_vm0, %v895_v12  ;;  %v834_v50 = vmul.f32 %v1851_v51, %v771_v26  ;;  %1056 = vrsqrt.f32 %v666_v34  ;;  %v612_v25 = vmul.f32 0.0625, %v518_v59 }
 0x170   :  { %v1047_v47 = vpop.eup %1046  ;;  %952 = vst.msk [vmem:[%s2253_s3 + $0xd0] sm:$0xff] %vm70_vm0, %v896_v54  ;;  %v835_v49 = vmul.f32 %v1851_v51, %v772_v43  ;;  %v667_v28 = vadd.f32 1e-05, %v611_v3 }
 0x171   :  { %v1049_v14 = vpop.eup %1048  ;;  %v897_v2 = vadd.f32 %v1857_v38, %v834_v50  ;;  %v773_v37 = vmul.f32 %v1047_v47, %v1682_v53  ;;  %v668_v16 = vadd.f32 1e-05, %v612_v25  ;;  %v521_v39 = vpop.xlane.xlu1 %520 }
 0x172   :  { %v524_v55 = vpop.xlane.xlu0 %523  ;;  %v898_v17 = vadd.f32 %v1857_v38, %v835_v49  ;;  %v774_v30 = vmul.f32 %v1049_v14, %v1691_v32  ;;  %1058 = vrsqrt.f32 %v667_v28  ;;  %v613_v9 = vmul.f32 0.0625, %v521_v39 }
 0x173   :  { %953 = vst.msk [vmem:[%s2253_s3 + $0xd8] sm:$0xff] %vm70_vm0, %v897_v2  ;;  %v836_v0 = vmul.f32 %v1851_v51, %v773_v37  ;;  %1060 = vrsqrt.f32 %v668_v16  ;;  %v614_v6 = vmul.f32 0.0625, %v524_v55 }
 0x174   :  { %v1051_v42 = vpop.eup %1050  ;;  %954 = vst.msk [vmem:[%s2253_s3 + $0xe0] sm:$0xff] %vm70_vm0, %v898_v17  ;;  %v837_v53 = vmul.f32 %v1851_v51, %v774_v30  ;;  %v669_v32 = vadd.f32 1e-05, %v613_v9 }
 0x175   :  { %v1053_v15 = vpop.eup %1052  ;;  %v899_v1 = vadd.f32 %v1857_v38, %v836_v0  ;;  %v775_v29 = vmul.f32 %v1051_v42, %v1694_v57  ;;  %v670_v8 = vadd.f32 1e-05, %v614_v6  ;;  %v527_v41 = vpop.xlane.xlu1 %526 }
 0x176   :  { %v530_v20 = vpop.xlane.xlu0 %529  ;;  %v900_v7 = vadd.f32 %v1857_v38, %v837_v53  ;;  %v776_v58 = vmul.f32 %v1053_v15, %v1703_v36  ;;  %1062 = vrsqrt.f32 %v669_v32  ;;  %v615_v63 = vmul.f32 0.0625, %v527_v41 }
 0x177   :  { %955 = vst.msk [vmem:[%s2253_s3 + $0xe8] sm:$0xff] %vm70_vm0, %v899_v1  ;;  %v838_v46 = vmul.f32 %v1851_v51, %v775_v29  ;;  %1064 = vrsqrt.f32 %v670_v8  ;;  %v616_v18 = vmul.f32 0.0625, %v530_v20 }
 0x178   :  { %v1055_v10 = vpop.eup %1054  ;;  %956 = vst.msk [vmem:[%s2253_s3 + $0xf0] sm:$0xff] %vm70_vm0, %v900_v7  ;;  %v839_v57 = vmul.f32 %v1851_v51, %v776_v58  ;;  %v671_v36 = vadd.f32 1e-05, %v615_v63 }
 0x179   :  { %v1057_v21 = vpop.eup %1056  ;;  %v901_v62 = vadd.f32 %v1857_v38, %v838_v46  ;;  %v777_v5 = vmul.f32 %v1055_v10, %v1706_v61  ;;  %v672_v31 = vadd.f32 1e-05, %v616_v18  ;;  %v533_v13 = vpop.xlane.xlu1 %532 }
 0x17a   :  { %v536_v22 = vpop.xlane.xlu0 %535  ;;  %v902_v45 = vadd.f32 %v1857_v38, %v839_v57  ;;  %v778_v24 = vmul.f32 %v1057_v21, %v1715_v40  ;;  %1066 = vrsqrt.f32 %v671_v36  ;;  %v617_v33 = vmul.f32 0.0625, %v533_v13 }
 0x17b   :  { %957 = vst.msk [vmem:[%s2253_s3 + $0xf8] sm:$0xff] %vm70_vm0, %v901_v62  ;;  %v840_v12 = vmul.f32 %v1851_v51, %v777_v5  ;;  %1068 = vrsqrt.f32 %v672_v31  ;;  %v618_v26 = vmul.f32 0.0625, %v536_v22 }
 0x17c   :  { %v1059_v34 = vpop.eup %1058  ;;  %958 = vst.msk [vmem:[%s2253_s3 + $0x100] sm:$0xff] %vm70_vm0, %v902_v45  ;;  %v841_v61 = vmul.f32 %v1851_v51, %v778_v24  ;;  %v673_v40 = vadd.f32 1e-05, %v617_v33 }
 0x17d   :  { %v1061_v23 = vpop.eup %1060  ;;  %v903_v59 = vadd.f32 %v1857_v38, %v840_v12  ;;  %v779_v54 = vmul.f32 %v1059_v34, %v1718_v4  ;;  %v674_v43 = vadd.f32 1e-05, %v618_v26  ;;  %v539_v3 = vpop.xlane.xlu1 %538 }
 0x17e   :  { %v542_v50 = vpop.xlane.xlu0 %541  ;;  %v904_v25 = vadd.f32 %v1857_v38, %v841_v61  ;;  %v780_v47 = vmul.f32 %v1061_v23, %v1727_v44  ;;  %1070 = vrsqrt.f32 %v673_v40  ;;  %v619_v49 = vmul.f32 0.0625, %v539_v3 }
 0x17f   :  { %959 = vst.msk [vmem:[%s2253_s3 + $0x108] sm:$0xff] %vm70_vm0, %v903_v59  ;;  %v842_v28 = vmul.f32 %v1851_v51, %v779_v54  ;;  %1072 = vrsqrt.f32 %v674_v43  ;;  %v620_v14 = vmul.f32 0.0625, %v542_v50 }
 0x180   :  { %v1063_v2 = vpop.eup %1062  ;;  %960 = vst.msk [vmem:[%s2253_s3 + $0x110] sm:$0xff] %vm70_vm0, %v904_v25  ;;  %v843_v4 = vmul.f32 %v1851_v51, %v780_v47  ;;  %v675_v44 = vadd.f32 1e-05, %v619_v49 }
 0x181   :  { %v1065_v37 = vpop.eup %1064  ;;  %v905_v16 = vadd.f32 %v1857_v38, %v842_v28  ;;  %v781_v39 = vmul.f32 %v1063_v2, %v1730_v11  ;;  %v676_v55 = vadd.f32 1e-05, %v620_v14  ;;  %v545_v17 = vpop.xlane.xlu1 %544  ;;  %v2294_v14 = vld [vmem:[#allocation8_spill] sm:$0xff] }
 0x182   :  { %v548_v30 = vpop.xlane.xlu0 %547  ;;  %v906_v9 = vadd.f32 %v1857_v38, %v843_v4  ;;  %v782_v0 = vmul.f32 %v1065_v37, %v1739_v48  ;;  %1074 = vrsqrt.f32 %v675_v44  ;;  %v621_v6 = vmul.f32 0.0625, %v545_v17 }
 0x183   :  { %961 = vst.msk [vmem:[%s2253_s3 + $0x118] sm:$0xff] %vm70_vm0, %v905_v16  ;;  %v844_v42 = vmul.f32 %v1851_v51, %v781_v39  ;;  %1076 = vrsqrt.f32 %v676_v55  ;;  %v622_v53 = vmul.f32 0.0625, %v548_v30  ;;  %v2295_v39 = vld [vmem:[#allocation9_spill] sm:$0xff] }
 0x184   :  { %v1067_v32 = vpop.eup %1066  ;;  %962 = vst.msk [vmem:[%s2253_s3 + $0x120] sm:$0xff] %vm70_vm0, %v906_v9  ;;  %v845_v11 = vmul.f32 %v1851_v51, %v782_v0  ;;  %v677_v48 = vadd.f32 1e-05, %v621_v6 }
 0x185   :  { %v1069_v15 = vpop.eup %1068  ;;  %v907_v1 = vadd.f32 %v1857_v38, %v844_v42  ;;  %v783_v29 = vmul.f32 %v1067_v32, %v1742_v19  ;;  %v678_v8 = vadd.f32 1e-05, %v622_v53  ;;  %v551_v41 = vpop.xlane.xlu1 %550 }
 0x186   :  { %v554_v20 = vpop.xlane.xlu0 %553  ;;  %v908_v7 = vadd.f32 %v1857_v38, %v845_v11  ;;  %v784_v58 = vmul.f32 %v1069_v15, %v1751_v52  ;;  %1078 = vrsqrt.f32 %v677_v48  ;;  %v623_v63 = vmul.f32 0.0625, %v551_v41  ;;  %v2296_v11 = vld [vmem:[#allocation10_spill] sm:$0xff] }
 0x187   :  { %963 = vst.msk [vmem:[%s2253_s3 + $0x128] sm:$0xff] %vm70_vm0, %v907_v1  ;;  %v846_v46 = vmul.f32 %v1851_v51, %v783_v29  ;;  %1080 = vrsqrt.f32 %v678_v8  ;;  %v624_v18 = vmul.f32 0.0625, %v554_v20  ;;  %v2297_v8 = vld [vmem:[#allocation11_spill] sm:$0xff] }
 0x188   :  { %v1071_v10 = vpop.eup %1070  ;;  %964 = vst.msk [vmem:[%s2253_s3 + $0x130] sm:$0xff] %vm70_vm0, %v908_v7  ;;  %v847_v19 = vmul.f32 %v1851_v51, %v784_v58  ;;  %v679_v52 = vadd.f32 1e-05, %v623_v63 }
 0x189   :  { %v1073_v57 = vpop.eup %1072  ;;  %v909_v36 = vadd.f32 %v1857_v38, %v846_v46  ;;  %v785_v21 = vmul.f32 %v1071_v10, %v1754_v27  ;;  %v680_v62 = vadd.f32 1e-05, %v624_v18  ;;  %v557_v5 = vpop.xlane.xlu1 %556 }
 0x18a   :  { %v560_v31 = vpop.xlane.xlu0 %559  ;;  %v910_v13 = vadd.f32 %v1857_v38, %v847_v19  ;;  %v786_v22 = vmul.f32 %v1073_v57, %v1763_v56  ;;  %1082 = vrsqrt.f32 %v679_v52  ;;  %v625_v45 = vmul.f32 0.0625, %v557_v5  ;;  %v2298_v19 = vld [vmem:[#allocation12_spill] sm:$0xff] }
 0x18b   :  { %965 = vst.msk [vmem:[%s2253_s3 + $0x138] sm:$0xff] %vm70_vm0, %v909_v36  ;;  %v848_v24 = vmul.f32 %v1851_v51, %v785_v21  ;;  %1084 = vrsqrt.f32 %v680_v62  ;;  %v626_v33 = vmul.f32 0.0625, %v560_v31  ;;  %v2299_v36 = vld [vmem:[#allocation2_spill] sm:$0xff] }
 0x18c   :  { %v1075_v12 = vpop.eup %1074  ;;  %966 = vst.msk [vmem:[%s2253_s3 + $0x140] sm:$0xff] %vm70_vm0, %v910_v13  ;;  %v849_v27 = vmul.f32 %v1851_v51, %v786_v22  ;;  %v681_v56 = vadd.f32 1e-05, %v625_v45  ;;  %v2300_v45 = vld [vmem:[#allocation3_spill] sm:$0xff] }
 0x18d   :  { %v1077_v26 = vpop.eup %1076  ;;  %v911_v34 = vadd.f32 %v1857_v38, %v848_v24  ;;  %v787_v61 = vmul.f32 %v1075_v12, %v1766_v35  ;;  %v682_v40 = vadd.f32 1e-05, %v626_v33  ;;  %v563_v23 = vpop.xlane.xlu1 %562  ;;  %v2301_v12 = vld [vmem:[#allocation4_spill] sm:$0xff] }
 0x18e   :  { %v566_v59 = vpop.xlane.xlu0 %565  ;;  %v912_v54 = vadd.f32 %v1857_v38, %v849_v27  ;;  %v788_v43 = vmul.f32 %v1077_v26, %v1775_v60  ;;  %1086 = vrsqrt.f32 %v681_v56  ;;  %v627_v3 = vmul.f32 0.0625, %v563_v23  ;;  %v2302_v23 = vld [vmem:[#allocation5_spill] sm:$0xff] }
 0x18f   :  { %967 = vst.msk [vmem:[%s2253_s3 + $0x148] sm:$0xff] %vm70_vm0, %v911_v34  ;;  %v850_v50 = vmul.f32 %v1851_v51, %v787_v61  ;;  %1088 = vrsqrt.f32 %v682_v40  ;;  %v628_v25 = vmul.f32 0.0625, %v566_v59 }
 0x190   :  { %v1079_v47 = vpop.eup %1078  ;;  %968 = vst.msk [vmem:[%s2253_s3 + $0x150] sm:$0xff] %vm70_vm0, %v912_v54  ;;  %v851_v35 = vmul.f32 %v1851_v51, %v788_v43  ;;  %v683_v60 = vadd.f32 1e-05, %v627_v3  ;;  %v2303_v43 = vld [vmem:[#allocation6_spill] sm:$0xff] }
 0x191   :  { %v1081_v49 = vpop.eup %1080  ;;  %v913_v28 = vadd.f32 %v1857_v38, %v850_v50  ;;  %v789_v2 = vmul.f32 %v1079_v47, %v2294_v14  ;;  %v684_v4 = vadd.f32 1e-05, %v628_v25  ;;  %v569_v44 = vpop.xlane.xlu1 %568 }
 0x192   :  { %v572_v37 = vpop.xlane.xlu0 %571  ;;  %v914_v16 = vadd.f32 %v1857_v38, %v851_v35  ;;  %v790_v55 = vmul.f32 %v1081_v49, %v2295_v39  ;;  %1090 = vrsqrt.f32 %v683_v60  ;;  %v629_v17 = vmul.f32 0.0625, %v569_v44  ;;  %v2304_v60 = vld [vmem:[#allocation13_spill] sm:$0xff] }
 0x193   :  { %969 = vst.msk [vmem:[%s2253_s3 + $0x158] sm:$0xff] %vm70_vm0, %v913_v28  ;;  %v852_v30 = vmul.f32 %v1851_v51, %v789_v2  ;;  %1092 = vrsqrt.f32 %v684_v4  ;;  %v630_v9 = vmul.f32 0.0625, %v572_v37 }
 0x194   :  { %v1083_v0 = vpop.eup %1082  ;;  %970 = vst.msk [vmem:[%s2253_s3 + $0x160] sm:$0xff] %vm70_vm0, %v914_v16  ;;  %v853_v6 = vmul.f32 %v1851_v51, %v790_v55  ;;  %v685_v42 = vadd.f32 1e-05, %v629_v17 }
 0x195   :  { %v1085_v53 = vpop.eup %1084  ;;  %v915_v32 = vadd.f32 %v1857_v38, %v852_v30  ;;  %v791_v48 = vmul.f32 %v1083_v0, %v2296_v11  ;;  %v686_v15 = vadd.f32 1e-05, %v630_v9  ;;  %v575_v1 = vpop.xlane.xlu1 %574 }
 0x196   :  { %v916_v29 = vadd.f32 %v1857_v38, %v853_v6  ;;  %v792_v41 = vmul.f32 %v1085_v53, %v2297_v8  ;;  %1094 = vrsqrt.f32 %v685_v42  ;;  %v631_v20 = vmul.f32 0.0625, %v575_v1 }
 0x197   :  { %971 = vst.msk [vmem:[%s2253_s3 + $0x168] sm:$0xff] %vm70_vm0, %v915_v32  ;;  %v854_v7 = vmul.f32 %v1851_v51, %v791_v48  ;;  %1096 = vrsqrt.f32 %v686_v15 }
 0x198   :  { %v1087_v58 = vpop.eup %1086  ;;  %972 = vst.msk [vmem:[%s2253_s3 + $0x170] sm:$0xff] %vm70_vm0, %v916_v29  ;;  %v855_v63 = vmul.f32 %v1851_v51, %v792_v41  ;;  %v687_v46 = vadd.f32 1e-05, %v631_v20 }
 0x199   :  { %v1089_v18 = vpop.eup %1088  ;;  %v917_v10 = vadd.f32 %v1857_v38, %v854_v7  ;;  %v793_v52 = vmul.f32 %v1087_v58, %v2298_v19 }
 0x19a   :  { %v918_v57 = vadd.f32 %v1857_v38, %v855_v63  ;;  %v794_v21 = vmul.f32 %v1089_v18, %v2299_v36  ;;  %1098 = vrsqrt.f32 %v687_v46 }
 0x19b   :  { %973 = vst.msk [vmem:[%s2253_s3 + $0x178] sm:$0xff] %vm70_vm0, %v917_v10  ;;  %v856_v62 = vmul.f32 %v1851_v51, %v793_v52 }
 0x19c   :  { %v1091_v5 = vpop.eup %1090  ;;  %974 = vst.msk [vmem:[%s2253_s3 + $0x180] sm:$0xff] %vm70_vm0, %v918_v57  ;;  %v857_v31 = vmul.f32 %v1851_v51, %v794_v21 }
 0x19d   :  { %v1093_v13 = vpop.eup %1092  ;;  %v919_v22 = vadd.f32 %v1857_v38, %v856_v62  ;;  %v795_v24 = vmul.f32 %v1091_v5, %v2300_v45 }
 0x19e   :  { %v920_v33 = vadd.f32 %v1857_v38, %v857_v31  ;;  %v796_v27 = vmul.f32 %v1093_v13, %v2301_v12 }
 0x19f   :  { %975 = vst.msk [vmem:[%s2253_s3 + $0x188] sm:$0xff] %vm70_vm0, %v919_v22  ;;  %v858_v56 = vmul.f32 %v1851_v51, %v795_v24 }
 0x1a0   :  { %v1095_v26 = vpop.eup %1094  ;;  %976 = vst.msk [vmem:[%s2253_s3 + $0x190] sm:$0xff] %vm70_vm0, %v920_v33  ;;  %v859_v34 = vmul.f32 %v1851_v51, %v796_v27 }
 0x1a1   :  { %v1097_v61 = vpop.eup %1096  ;;  %v921_v40 = vadd.f32 %v1857_v38, %v858_v56  ;;  %v797_v59 = vmul.f32 %v1095_v26, %v2302_v23 }
 0x1a2   :  { %v922_v54 = vadd.f32 %v1857_v38, %v859_v34  ;;  %v798_v3 = vmul.f32 %v1097_v61, %v2303_v43 }
 0x1a3   :  { %977 = vst.msk [vmem:[%s2253_s3 + $0x198] sm:$0xff] %vm70_vm0, %v921_v40  ;;  %v860_v50 = vmul.f32 %v1851_v51, %v797_v59 }
 0x1a4   :  { %v1099_v25 = vpop.eup %1098  ;;  %978 = vst.msk [vmem:[%s2253_s3 + $0x1a0] sm:$0xff] %vm70_vm0, %v922_v54  ;;  %v861_v47 = vmul.f32 %v1851_v51, %v798_v3 }
 0x1a5   :  { %v923_v35 = vadd.f32 %v1857_v38, %v860_v50  ;;  %v799_v49 = vmul.f32 %v1099_v25, %v2304_v60 }
 0x1a6   :  { %v924_v28 = vadd.f32 %v1857_v38, %v861_v47 }
 0x1a7   :  { %979 = vst.msk [vmem:[%s2253_s3 + $0x1a8] sm:$0xff] %vm70_vm0, %v923_v35  ;;  %v862_v14 = vmul.f32 %v1851_v51, %v799_v49 }
 0x1a8   :  { %980 = vst.msk [vmem:[%s2253_s3 + $0x1b0] sm:$0xff] %vm70_vm0, %v924_v28 }
 0x1a9   :  { %v925_v2 = vadd.f32 %v1857_v38, %v862_v14 }
 0x1ab   :  { %981 = vst.msk [vmem:[%s2253_s3 + $0x1b8] sm:$0xff] %vm70_vm0, %v925_v2 }

</bundles_post_ra>
